<compile_context>
chip_gen: v7x
topology: tpu7x:2x2x1
jax: 0.10.0
libtpu: 0.0.40
codegen_flags: <defaults>
</compile_context>

<pallas_src>
import math
import functools

import jax
import jax.numpy as jnp
from jax import lax
from jax.experimental import pallas as pl
from jax.experimental.pallas import tpu as pltpu


_MASK_NEG = -1e30  # plain Python float -> lowered as a literal (no captured consts)


def _layernorm(h, g, b, eps=1e-5):
    # f32 statistics (matches PyTorch LayerNorm numerics).
    mu = jnp.mean(h, axis=-1, keepdims=True)
    c = h - mu
    var = jnp.mean(c * c, axis=-1, keepdims=True)
    return c * lax.rsqrt(var + eps) * g + b


def gpt2_block_kernel(
    x_ref,
    ln1_g_ref, ln1_b_ref,
    w_qkv_ref, b_qkv_ref,
    w_attn_proj_ref, b_attn_proj_ref,
    ln2_g_ref, ln2_b_ref,
    w_fc_ref, b_fc_ref,
    w_mlp_proj_ref, b_mlp_proj_ref,
    out_ref,
    *, n_head: int, head_dim: int, kv_chunk: int, bf16_trans: bool,
):
    f32 = jnp.float32
    bf16 = jnp.bfloat16
    tdt = bf16 if bf16_trans else f32   # dtype for exp / tanh (EUP) math

    x = x_ref[0]                        # (T, C) f32
    T, C = x.shape
    H, hd = n_head, head_dim

    # ---------------- attention branch ----------------
    h = _layernorm(x, ln1_g_ref[...], ln1_b_ref[...])
    # 1/sqrt(head_dim) is pre-folded into the q columns of w_qkv / b_qkv (host side).
    qkv = jnp.dot(h.astype(bf16), w_qkv_ref[...],
                  preferred_element_type=f32) + b_qkv_ref[...]      # (T, 3C) f32

    # (T, C) -> (H, T, hd): one reshape + one leading-axis swap per tensor
    # (no per-head 64-wide stack/concat relayouts).
    def heads(z):
        return jnp.swapaxes(z.astype(bf16).reshape(T, H, hd), 0, 1)

    q = heads(qkv[:, 0 * C:1 * C])      # (H, T, hd) bf16
    k = heads(qkv[:, 1 * C:2 * C])
    v = heads(qkv[:, 2 * C:3 * C])

    # Online-softmax over KV chunks (flash style): resident score tile is
    # (H, T, kv_chunk) instead of (H, T, T).  Normalization happens once, after
    # the p@v matmuls, on the (H, T, hd) accumulator.
    n_chunks = T // kv_chunk
    row = lax.broadcasted_iota(jnp.int32, (T, kv_chunk), 0)     # query position
    col = lax.broadcasted_iota(jnp.int32, (T, kv_chunk), 1)     # key pos within chunk

    m = jnp.full((H, T, 1), _MASK_NEG, dtype=f32)
    l = jnp.zeros((H, T, 1), dtype=f32)
    acc = jnp.zeros((H, T, hd), dtype=f32)

    # TODO(synk): for very long contexts (T >~ 2048) turn this static unroll into a
    # lax.fori_loop / pltpu.emit_pipeline over KV tiles streamed from HBM and add a
    # Tq grid axis so v7x's 64 MiB VMEM only holds O(tq*tk + tq*hd) per step.
    for ci in range(n_chunks):
        k_c = k[:, ci * kv_chunk:(ci + 1) * kv_chunk, :]        # (H, tk, hd)
        v_c = v[:, ci * kv_chunk:(ci + 1) * kv_chunk, :]
        # q . k^T, all heads in one batched MXU contraction (no explicit .T).
        s = lax.dot_general(q, k_c, (((2,), (2,)), ((0,), (0,))),
                            preferred_element_type=f32)          # (H, T, tk) f32
        # Causal mask fused into the where (no separate (T,T) bias tensor / add).
        mask = row >= (col + ci * kv_chunk)                      # (T, tk) bool
        s = jnp.where(mask[None, :, :], s, _MASK_NEG)
        m_new = jnp.maximum(m, jnp.max(s, axis=-1, keepdims=True))
        alpha = jnp.exp(m - m_new)                               # (H, T, 1) f32
        e = jnp.exp((s - m_new).astype(tdt))                     # (H, T, tk)
        l = alpha * l + jnp.sum(e, axis=-1, keepdims=True, dtype=f32)
        pv = lax.dot_general(e.astype(bf16), v_c, (((2,), (1,)), ((0,), (0,))),
                             preferred_element_type=f32)         # (H, T, hd) f32
        acc = alpha * acc + pv
        m = m_new

    # Normalize AFTER p@v: H*T*hd multiplies instead of H*T*T; EUP approx recip.
    o = acc * pl.reciprocal(l, approx=True)                      # (H, T, hd) f32

    # Merge heads with a single transpose + reshape.
    attn_in = jnp.swapaxes(o, 0, 1).reshape(T, C)                # (T, C)
    attn = jnp.dot(attn_in.astype(bf16), w_attn_proj_ref[...],
                   preferred_element_type=f32) + b_attn_proj_ref[...]

    x1 = x + attn                                                # first residual

    # ---------------- MLP branch ----------------
    h2 = _layernorm(x1, ln2_g_ref[...], ln2_b_ref[...])
    a = jnp.dot(h2.astype(bf16), w_fc_ref[...],
                preferred_element_type=f32) + b_fc_ref[...]      # (T, 4C) f32
    # NewGELUActivation (tanh approximation); tanh on bf16 EUP for v6e/v7x, f32 on v5e.
    ah = a.astype(tdt)
    t = jnp.tanh(0.7978845608028654 * (ah + 0.044715 * (ah * ah * ah)))
    g = 0.5 * a * (1.0 + t.astype(f32))
    mlp = jnp.dot(g.astype(bf16), w_mlp_proj_ref[...],
                  preferred_element_type=f32) + b_mlp_proj_ref[...]

    out_ref[0] = x1 + mlp                                        # second residual


def _tpu_generation():
    try:
        kind = jax.devices()[0].device_kind.lower()
    except Exception:
        return 0
    for g in (7, 6, 5, 4):
        if f"v{g}" in kind or f"tpu{g}" in kind:
            return g
    return 0


def _vmem_limit_bytes(gen):
    try:
        cap = int(pltpu.get_tpu_info().vmem_capacity_bytes)
    except Exception:
        cap = 0
    if cap <= 0:
        # v7x has 64 MiB/core; v4/v5e/v6e have 128 MiB.
        cap = (64 if gen >= 7 else 128) * 1024 * 1024
    # Leave explicit headroom (>= 12 MiB) for compiler-internal scratch.
    return max(cap - max(cap // 8, 12 * 1024 * 1024), 32 * 1024 * 1024)


def _pick_kv_chunk(T):
    for c in (512, 256, 128):
        if T >= 2 * c and T % c == 0:
            return c
    return T


def _weight_spec(shape):
    # Single-buffered replicated weights: whole array resident in VMEM (no
    # per-grid-step double-buffered DMA).  Static capability check (no try/except
    # around execution); falls back to a replicated blocked spec on older jax.
    ms = getattr(pltpu, "MemorySpace", None) or getattr(pltpu, "TPUMemorySpace", None)
    if ms is not None and hasattr(ms, "VMEM"):
        return pl.BlockSpec(memory_space=ms.VMEM)
    nd = len(shape)
    return pl.BlockSpec(shape, lambda b: (0,) * nd)


def gpt2_block(x, params, *, n_head: int):
    B, T, C = x.shape
    assert C % n_head == 0
    head_dim = C // n_head

    x = x.astype(jnp.float32)
    bf16 = jnp.bfloat16
    f32 = jnp.float32

    # Fold the attention 1/sqrt(head_dim) scale into the q columns of the QKV
    # projection on the host (free at runtime).
    scale = 1.0 / math.sqrt(head_dim)
    col_scale = jnp.concatenate([jnp.full((C,), scale, f32), jnp.ones((2 * C,), f32)])
    w_qkv = (params["w_qkv"] * col_scale[None, :]).astype(bf16)
    b_qkv = (params["b_qkv"] * col_scale[None, :]).astype(f32)

    operands = (
        x,
        params["ln1_g"].astype(f32), params["ln1_b"].astype(f32),
        w_qkv, b_qkv,
        params["w_attn_proj"].astype(bf16), params["b_attn_proj"].astype(f32),
        params["ln2_g"].astype(f32), params["ln2_b"].astype(f32),
        params["w_fc"].astype(bf16), params["b_fc"].astype(f32),
        params["w_mlp_proj"].astype(bf16), params["b_mlp_proj"].astype(f32),
    )

    gen = _tpu_generation()
    kernel = functools.partial(
        gpt2_block_kernel, n_head=n_head, head_dim=head_dim,
        kv_chunk=_pick_kv_chunk(T), bf16_trans=(gen >= 6))

    in_specs = [pl.BlockSpec((1, T, C), lambda b: (b, 0, 0))]
    in_specs += [_weight_spec(op.shape) for op in operands[1:]]
    out_spec = pl.BlockSpec((1, T, C), lambda b: (b, 0, 0))

    # TODO(synk): hide the first-iteration weight DMA behind a cross-pallas_call
    # prefetch (semaphore + VMEM-ref future) for small-B prefill/decode calls.
    return pl.pallas_call(
        kernel,
        out_shape=jax.ShapeDtypeStruct((B, T, C), jnp.float32),
        grid_spec=pltpu.PrefetchScalarGridSpec(
            num_scalar_prefetch=0,
            grid=(B,),
            in_specs=in_specs,
            out_specs=out_spec,
        ),
        compiler_params=pltpu.CompilerParams(
            dimension_semantics=("parallel",),   # batch split across v7x's two TCs
            vmem_limit_bytes=_vmem_limit_bytes(gen),
        ),
    )(*operands)


def init_params(key, n_embd):
    C = n_embd
    ks = jax.random.split(key, 4)
    std = 0.02
    return {
        # LayerNorm: weight=1, bias=0 (PyTorch default)
        "ln1_g": jnp.ones((1, C), jnp.float32),
        "ln1_b": jnp.zeros((1, C), jnp.float32),
        "ln2_g": jnp.ones((1, C), jnp.float32),
        "ln2_b": jnp.zeros((1, C), jnp.float32),
        # Conv1D(3C, C): weight (C, 3C), normal(0, 0.02), bias zeros
        "w_qkv": std * jax.random.normal(ks[0], (C, 3 * C), jnp.float32),
        "b_qkv": jnp.zeros((1, 3 * C), jnp.float32),
        "w_attn_proj": std * jax.random.normal(ks[1], (C, C), jnp.float32),
        "b_attn_proj": jnp.zeros((1, C), jnp.float32),
        "w_fc": std * jax.random.normal(ks[2], (C, 4 * C), jnp.float32),
        "b_fc": jnp.zeros((1, 4 * C), jnp.float32),
        "w_mlp_proj": std * jax.random.normal(ks[3], (4 * C, C), jnp.float32),
        "b_mlp_proj": jnp.zeros((1, C), jnp.float32),
    }


def gpt2_block_ref(x, params, *, n_head):
    """Pure-JAX f32 reference (matches the PyTorch module in eval mode)."""
    B, T, C = x.shape
    hd = C // n_head

    def ln(h, g, b):
        mu = h.mean(-1, keepdims=True)
        var = ((h - mu) ** 2).mean(-1, keepdims=True)
        return (h - mu) / jnp.sqrt(var + 1e-5) * g + b

    h = ln(x, params["ln1_g"], params["ln1_b"])
    qkv = h @ params["w_qkv"] + params["b_qkv"]
    q, k, v = jnp.split(qkv, 3, axis=-1)

    def sh(z):
        return z.reshape(B, T, n_head, hd).transpose(0, 2, 1, 3)

    q, k, v = sh(q), sh(k), sh(v)
    s = (q @ k.transpose(0, 1, 3, 2)) / math.sqrt(hd)
    mask = jnp.tril(jnp.ones((T, T), bool))
    s = jnp.where(mask, s, -jnp.inf)
    p = jax.nn.softmax(s, axis=-1)
    o = (p @ v).transpose(0, 2, 1, 3).reshape(B, T, C)
    x1 = x + o @ params["w_attn_proj"] + params["b_attn_proj"]
    h2 = ln(x1, params["ln2_g"], params["ln2_b"])
    a = h2 @ params["w_fc"] + params["b_fc"]
    g = 0.5 * a * (1.0 + jnp.tanh(math.sqrt(2.0 / math.pi) * (a + 0.044715 * a ** 3)))
    return x1 + g @ params["w_mlp_proj"] + params["b_mlp_proj"]


if __name__ == "__main__":
    B, T, C, H = 2, 8, 32, 4            # batch, seq, n_embd, n_head
    key = jax.random.PRNGKey(0)
    kx, kp = jax.random.split(key)
    x = jax.random.normal(kx, (B, T, C), jnp.float32)
    params = init_params(kp, C)

    out = gpt2_block(x, params, n_head=H)
    jax.block_until_ready(out)
    assert out.shape == (B, T, C)

    ref = gpt2_block_ref(x, params, n_head=H)
    err = float(jnp.max(jnp.abs(out - ref)))
    assert err < 5e-2, f"max abs err too large: {err}"
    print("KERNEL_OK")
</pallas_src>

<mosaic_0001>
module attributes {stable_mosaic.version = 11 : i64} {
  func.func @gpt2_block_kernel(%arg0: i32, %arg1: memref<1x8x32xf32, #tpu.memory_space<vmem>>, %arg2: memref<1x32xf32, #tpu.memory_space<vmem>>, %arg3: memref<1x32xf32, #tpu.memory_space<vmem>>, %arg4: memref<32x96xbf16, #tpu.memory_space<vmem>>, %arg5: memref<1x96xf32, #tpu.memory_space<vmem>>, %arg6: memref<32x32xbf16, #tpu.memory_space<vmem>>, %arg7: memref<1x32xf32, #tpu.memory_space<vmem>>, %arg8: memref<1x32xf32, #tpu.memory_space<vmem>>, %arg9: memref<1x32xf32, #tpu.memory_space<vmem>>, %arg10: memref<32x128xbf16, #tpu.memory_space<vmem>>, %arg11: memref<1x128xf32, #tpu.memory_space<vmem>>, %arg12: memref<128x32xbf16, #tpu.memory_space<vmem>>, %arg13: memref<1x32xf32, #tpu.memory_space<vmem>>, %arg14: memref<1x8x32xf32, #tpu.memory_space<vmem>>) attributes {dimension_semantics = [#tpu.dimension_semantics<parallel>], iteration_bounds = array<i64: 2>, scalar_prefetch = 0 : i64, scratch_operands = 0 : i64, tpu.core_type = #tpu.core_type<tc>, window_params = [{transform_indices = @transform_0, window_bounds = array<i64: 1, 8, 32>}, {pipeline_mode = #tpu.pipeline_mode<synchronous>, transform_indices = @transform_1, window_bounds = array<i64: 1, 32>}, {pipeline_mode = #tpu.pipeline_mode<synchronous>, transform_indices = @transform_2, window_bounds = array<i64: 1, 32>}, {pipeline_mode = #tpu.pipeline_mode<synchronous>, transform_indices = @transform_3, window_bounds = array<i64: 32, 96>}, {pipeline_mode = #tpu.pipeline_mode<synchronous>, transform_indices = @transform_4, window_bounds = array<i64: 1, 96>}, {pipeline_mode = #tpu.pipeline_mode<synchronous>, transform_indices = @transform_5, window_bounds = array<i64: 32, 32>}, {pipeline_mode = #tpu.pipeline_mode<synchronous>, transform_indices = @transform_6, window_bounds = array<i64: 1, 32>}, {pipeline_mode = #tpu.pipeline_mode<synchronous>, transform_indices = @transform_7, window_bounds = array<i64: 1, 32>}, {pipeline_mode = #tpu.pipeline_mode<synchronous>, transform_indices = @transform_8, window_bounds = array<i64: 1, 32>}, {pipeline_mode = #tpu.pipeline_mode<synchronous>, transform_indices = @transform_9, window_bounds = array<i64: 32, 128>}, {pipeline_mode = #tpu.pipeline_mode<synchronous>, transform_indices = @transform_10, window_bounds = array<i64: 1, 128>}, {pipeline_mode = #tpu.pipeline_mode<synchronous>, transform_indices = @transform_11, window_bounds = array<i64: 128, 32>}, {pipeline_mode = #tpu.pipeline_mode<synchronous>, transform_indices = @transform_12, window_bounds = array<i64: 1, 32>}, {transform_indices = @transform_13, window_bounds = array<i64: 1, 8, 32>}]} {
    %c0 = arith.constant 0 : index
    %c0_0 = arith.constant 0 : index
    %c0_1 = arith.constant 0 : index
    %0 = vector.load %arg1[%c0, %c0_0, %c0_1] : memref<1x8x32xf32, #tpu.memory_space<vmem>>, vector<1x8x32xf32>
    %1 = vector.shape_cast %0 : vector<1x8x32xf32> to vector<8x32xf32>
    %c0_2 = arith.constant 0 : index
    %c0_3 = arith.constant 0 : index
    %2 = vector.load %arg2[%c0_2, %c0_3] : memref<1x32xf32, #tpu.memory_space<vmem>>, vector<1x32xf32>
    %c0_4 = arith.constant 0 : index
    %c0_5 = arith.constant 0 : index
    %3 = vector.load %arg3[%c0_4, %c0_5] : memref<1x32xf32, #tpu.memory_space<vmem>>, vector<1x32xf32>
    %cst = arith.constant dense<0.000000e+00> : vector<8xf32>
    %4 = vector.multi_reduction <add>, %1, %cst [1] : vector<8x32xf32> to vector<8xf32>
    %5 = vector.shape_cast %4 : vector<8xf32> to vector<8x1xf32>
    %cst_6 = arith.constant 3.200000e+01 : f32
    %6 = vector.broadcast %cst_6 : f32 to vector<8x1xf32>
    %7 = arith.divf %5, %6 : vector<8x1xf32>
    %8 = vector.broadcast %7 : vector<8x1xf32> to vector<8x32xf32>
    %9 = arith.subf %1, %8 : vector<8x32xf32>
    %10 = arith.mulf %9, %9 : vector<8x32xf32>
    %cst_7 = arith.constant dense<0.000000e+00> : vector<8xf32>
    %11 = vector.multi_reduction <add>, %10, %cst_7 [1] : vector<8x32xf32> to vector<8xf32>
    %12 = vector.shape_cast %11 : vector<8xf32> to vector<8x1xf32>
    %cst_8 = arith.constant 3.200000e+01 : f32
    %13 = vector.broadcast %cst_8 : f32 to vector<8x1xf32>
    %14 = arith.divf %12, %13 : vector<8x1xf32>
    %cst_9 = arith.constant 9.99999974E-6 : f32
    %15 = vector.broadcast %cst_9 : f32 to vector<8x1xf32>
    %16 = arith.addf %14, %15 : vector<8x1xf32>
    %17 = math.rsqrt %16 : vector<8x1xf32>
    %18 = vector.broadcast %17 : vector<8x1xf32> to vector<8x32xf32>
    %19 = arith.mulf %9, %18 : vector<8x32xf32>
    %20 = vector.broadcast %2 : vector<1x32xf32> to vector<8x32xf32>
    %21 = arith.mulf %19, %20 : vector<8x32xf32>
    %22 = vector.broadcast %3 : vector<1x32xf32> to vector<8x32xf32>
    %23 = arith.addf %21, %22 : vector<8x32xf32>
    %24 = arith.truncf %23 : vector<8x32xf32> to vector<8x32xbf16>
    %c0_10 = arith.constant 0 : index
    %c0_11 = arith.constant 0 : index
    %25 = vector.load %arg4[%c0_10, %c0_11] : memref<32x96xbf16, #tpu.memory_space<vmem>>, vector<32x96xbf16>
    %cst_12 = arith.constant dense<0.000000e+00> : vector<8x96xf32>
    %26 = tpu.matmul %24, %25, %cst_12 {dimension_numbers = #tpu.dot_dimension_numbers<[1], [0], [0], [1], [0, 0, 1, 1], [], []>} : vector<8x32xbf16>, vector<32x96xbf16>, vector<8x96xf32> -> vector<8x96xf32>
    %c0_13 = arith.constant 0 : index
    %c0_14 = arith.constant 0 : index
    %27 = vector.load %arg5[%c0_13, %c0_14] : memref<1x96xf32, #tpu.memory_space<vmem>>, vector<1x96xf32>
    %28 = vector.broadcast %27 : vector<1x96xf32> to vector<8x96xf32>
    %29 = arith.addf %26, %28 : vector<8x96xf32>
    %30 = vector.extract_strided_slice %29 {offsets = [0, 0], sizes = [8, 32], strides = [1, 1]} : vector<8x96xf32> to vector<8x32xf32>
    %31 = arith.truncf %30 : vector<8x32xf32> to vector<8x32xbf16>
    %32 = vector.shape_cast %31 : vector<8x32xbf16> to vector<8x4x8xbf16>
    %33 = tpu.transpose %32, [1, 0, 2] : vector<8x4x8xbf16> -> vector<4x8x8xbf16>
    %34 = vector.extract_strided_slice %29 {offsets = [0, 32], sizes = [8, 32], strides = [1, 1]} : vector<8x96xf32> to vector<8x32xf32>
    %35 = arith.truncf %34 : vector<8x32xf32> to vector<8x32xbf16>
    %36 = vector.shape_cast %35 : vector<8x32xbf16> to vector<8x4x8xbf16>
    %37 = tpu.transpose %36, [1, 0, 2] : vector<8x4x8xbf16> -> vector<4x8x8xbf16>
    %38 = vector.extract_strided_slice %29 {offsets = [0, 64], sizes = [8, 32], strides = [1, 1]} : vector<8x96xf32> to vector<8x32xf32>
    %39 = arith.truncf %38 : vector<8x32xf32> to vector<8x32xbf16>
    %40 = vector.shape_cast %39 : vector<8x32xbf16> to vector<8x4x8xbf16>
    %41 = tpu.transpose %40, [1, 0, 2] : vector<8x4x8xbf16> -> vector<4x8x8xbf16>
    %42 = tpu.iota {dimensions = array<i32: 0>} : vector<8x8xi32>
    %43 = tpu.iota {dimensions = array<i32: 1>} : vector<8x8xi32>
    %cst_15 = arith.constant -1.000000e+30 : f32
    %44 = vector.broadcast %cst_15 : f32 to vector<4x8x1xf32>
    %cst_16 = arith.constant 0.000000e+00 : f32
    %45 = vector.broadcast %cst_16 : f32 to vector<4x8x1xf32>
    %cst_17 = arith.constant 0.000000e+00 : f32
    %46 = vector.broadcast %cst_17 : f32 to vector<4x8x8xf32>
    %cst_18 = arith.constant dense<0.000000e+00> : vector<4x8x8xf32>
    %47 = tpu.matmul %33, %37, %cst_18 {dimension_numbers = #tpu.dot_dimension_numbers<[2], [2], [1], [1], [0, 0, 0, 1, 1, 1], [0], [0]>} : vector<4x8x8xbf16>, vector<4x8x8xbf16>, vector<4x8x8xf32> -> vector<4x8x8xf32>
    %c0_i32 = arith.constant 0 : i32
    %48 = vector.broadcast %c0_i32 : i32 to vector<8x8xi32>
    %49 = arith.addi %43, %48 : vector<8x8xi32>
    %50 = arith.cmpi sge, %42, %49 : vector<8x8xi32>
    %51 = vector.shape_cast %50 : vector<8x8xi1> to vector<1x8x8xi1>
    %cst_19 = arith.constant -1.000000e+30 : f32
    %52 = vector.shape_cast %51 : vector<1x8x8xi1> to vector<1x8x8xi1>
    %53 = vector.broadcast %52 : vector<1x8x8xi1> to vector<4x8x8xi1>
    %54 = vector.broadcast %cst_19 : f32 to vector<4x8x8xf32>
    %55 = arith.select %53, %47, %54 : vector<4x8x8xi1>, vector<4x8x8xf32>
    %cst_20 = arith.constant dense<0xFF800000> : vector<4x8xf32>
    %56 = vector.multi_reduction <maximumf>, %55, %cst_20 [2] : vector<4x8x8xf32> to vector<4x8xf32>
    %57 = vector.shape_cast %56 : vector<4x8xf32> to vector<4x8x1xf32>
    %58 = arith.maximumf %44, %57 : vector<4x8x1xf32>
    %59 = arith.subf %44, %58 : vector<4x8x1xf32>
    %60 = math.exp %59 : vector<4x8x1xf32>
    %61 = vector.broadcast %58 : vector<4x8x1xf32> to vector<4x8x8xf32>
    %62 = arith.subf %55, %61 : vector<4x8x8xf32>
    %63 = math.exp %62 : vector<4x8x8xf32>
    %64 = arith.mulf %60, %45 : vector<4x8x1xf32>
    %cst_21 = arith.constant dense<0.000000e+00> : vector<4x8xf32>
    %65 = vector.multi_reduction <add>, %63, %cst_21 [2] : vector<4x8x8xf32> to vector<4x8xf32>
    %66 = vector.shape_cast %65 : vector<4x8xf32> to vector<4x8x1xf32>
    %67 = arith.addf %64, %66 : vector<4x8x1xf32>
    %68 = arith.truncf %63 : vector<4x8x8xf32> to vector<4x8x8xbf16>
    %cst_22 = arith.constant dense<0.000000e+00> : vector<4x8x8xf32>
    %69 = tpu.matmul %68, %41, %cst_22 {dimension_numbers = #tpu.dot_dimension_numbers<[2], [1], [1], [2], [0, 0, 0, 1, 1, 2], [0], [0]>} : vector<4x8x8xbf16>, vector<4x8x8xbf16>, vector<4x8x8xf32> -> vector<4x8x8xf32>
    %70 = vector.broadcast %60 : vector<4x8x1xf32> to vector<4x8x8xf32>
    %71 = arith.mulf %70, %46 : vector<4x8x8xf32>
    %72 = arith.addf %71, %69 : vector<4x8x8xf32>
    %73 = tpu.reciprocal %67 {approx = true} : vector<4x8x1xf32> -> vector<4x8x1xf32>
    %74 = vector.broadcast %73 : vector<4x8x1xf32> to vector<4x8x8xf32>
    %75 = arith.mulf %72, %74 : vector<4x8x8xf32>
    %76 = tpu.transpose %75, [1, 0, 2] : vector<4x8x8xf32> -> vector<8x4x8xf32>
    %77 = vector.shape_cast %76 : vector<8x4x8xf32> to vector<8x32xf32>
    %78 = arith.truncf %77 : vector<8x32xf32> to vector<8x32xbf16>
    %c0_23 = arith.constant 0 : index
    %c0_24 = arith.constant 0 : index
    %79 = vector.load %arg6[%c0_23, %c0_24] : memref<32x32xbf16, #tpu.memory_space<vmem>>, vector<32x32xbf16>
    %cst_25 = arith.constant dense<0.000000e+00> : vector<8x32xf32>
    %80 = tpu.matmul %78, %79, %cst_25 {dimension_numbers = #tpu.dot_dimension_numbers<[1], [0], [0], [1], [0, 0, 1, 1], [], []>} : vector<8x32xbf16>, vector<32x32xbf16>, vector<8x32xf32> -> vector<8x32xf32>
    %c0_26 = arith.constant 0 : index
    %c0_27 = arith.constant 0 : index
    %81 = vector.load %arg7[%c0_26, %c0_27] : memref<1x32xf32, #tpu.memory_space<vmem>>, vector<1x32xf32>
    %82 = vector.broadcast %81 : vector<1x32xf32> to vector<8x32xf32>
    %83 = arith.addf %80, %82 : vector<8x32xf32>
    %84 = arith.addf %1, %83 : vector<8x32xf32>
    %c0_28 = arith.constant 0 : index
    %c0_29 = arith.constant 0 : index
    %85 = vector.load %arg8[%c0_28, %c0_29] : memref<1x32xf32, #tpu.memory_space<vmem>>, vector<1x32xf32>
    %c0_30 = arith.constant 0 : index
    %c0_31 = arith.constant 0 : index
    %86 = vector.load %arg9[%c0_30, %c0_31] : memref<1x32xf32, #tpu.memory_space<vmem>>, vector<1x32xf32>
    %cst_32 = arith.constant dense<0.000000e+00> : vector<8xf32>
    %87 = vector.multi_reduction <add>, %84, %cst_32 [1] : vector<8x32xf32> to vector<8xf32>
    %88 = vector.shape_cast %87 : vector<8xf32> to vector<8x1xf32>
    %cst_33 = arith.constant 3.200000e+01 : f32
    %89 = vector.broadcast %cst_33 : f32 to vector<8x1xf32>
    %90 = arith.divf %88, %89 : vector<8x1xf32>
    %91 = vector.broadcast %90 : vector<8x1xf32> to vector<8x32xf32>
    %92 = arith.subf %84, %91 : vector<8x32xf32>
    %93 = arith.mulf %92, %92 : vector<8x32xf32>
    %cst_34 = arith.constant dense<0.000000e+00> : vector<8xf32>
    %94 = vector.multi_reduction <add>, %93, %cst_34 [1] : vector<8x32xf32> to vector<8xf32>
    %95 = vector.shape_cast %94 : vector<8xf32> to vector<8x1xf32>
    %cst_35 = arith.constant 3.200000e+01 : f32
    %96 = vector.broadcast %cst_35 : f32 to vector<8x1xf32>
    %97 = arith.divf %95, %96 : vector<8x1xf32>
    %cst_36 = arith.constant 9.99999974E-6 : f32
    %98 = vector.broadcast %cst_36 : f32 to vector<8x1xf32>
    %99 = arith.addf %97, %98 : vector<8x1xf32>
    %100 = math.rsqrt %99 : vector<8x1xf32>
    %101 = vector.broadcast %100 : vector<8x1xf32> to vector<8x32xf32>
    %102 = arith.mulf %92, %101 : vector<8x32xf32>
    %103 = vector.broadcast %85 : vector<1x32xf32> to vector<8x32xf32>
    %104 = arith.mulf %102, %103 : vector<8x32xf32>
    %105 = vector.broadcast %86 : vector<1x32xf32> to vector<8x32xf32>
    %106 = arith.addf %104, %105 : vector<8x32xf32>
    %107 = arith.truncf %106 : vector<8x32xf32> to vector<8x32xbf16>
    %c0_37 = arith.constant 0 : index
    %c0_38 = arith.constant 0 : index
    %108 = vector.load %arg10[%c0_37, %c0_38] : memref<32x128xbf16, #tpu.memory_space<vmem>>, vector<32x128xbf16>
    %cst_39 = arith.constant dense<0.000000e+00> : vector<8x128xf32>
    %109 = tpu.matmul %107, %108, %cst_39 {dimension_numbers = #tpu.dot_dimension_numbers<[1], [0], [0], [1], [0, 0, 1, 1], [], []>} : vector<8x32xbf16>, vector<32x128xbf16>, vector<8x128xf32> -> vector<8x128xf32>
    %c0_40 = arith.constant 0 : index
    %c0_41 = arith.constant 0 : index
    %110 = vector.load %arg11[%c0_40, %c0_41] : memref<1x128xf32, #tpu.memory_space<vmem>>, vector<1x128xf32>
    %111 = vector.broadcast %110 : vector<1x128xf32> to vector<8x128xf32>
    %112 = arith.addf %109, %111 : vector<8x128xf32>
    %113 = arith.mulf %112, %112 : vector<8x128xf32>
    %114 = arith.mulf %113, %112 : vector<8x128xf32>
    %cst_42 = arith.constant 4.471500e-02 : f32
    %115 = vector.broadcast %cst_42 : f32 to vector<8x128xf32>
    %116 = arith.mulf %115, %114 : vector<8x128xf32>
    %117 = arith.addf %112, %116 : vector<8x128xf32>
    %cst_43 = arith.constant 0.797884583 : f32
    %118 = vector.broadcast %cst_43 : f32 to vector<8x128xf32>
    %119 = arith.mulf %118, %117 : vector<8x128xf32>
    %120 = math.tanh %119 : vector<8x128xf32>
    %cst_44 = arith.constant 5.000000e-01 : f32
    %121 = vector.broadcast %cst_44 : f32 to vector<8x128xf32>
    %122 = arith.mulf %121, %112 : vector<8x128xf32>
    %cst_45 = arith.constant 1.000000e+00 : f32
    %123 = vector.broadcast %cst_45 : f32 to vector<8x128xf32>
    %124 = arith.addf %123, %120 : vector<8x128xf32>
    %125 = arith.mulf %122, %124 : vector<8x128xf32>
    %126 = arith.truncf %125 : vector<8x128xf32> to vector<8x128xbf16>
    %c0_46 = arith.constant 0 : index
    %c0_47 = arith.constant 0 : index
    %127 = vector.load %arg12[%c0_46, %c0_47] : memref<128x32xbf16, #tpu.memory_space<vmem>>, vector<128x32xbf16>
    %cst_48 = arith.constant dense<0.000000e+00> : vector<8x32xf32>
    %128 = tpu.matmul %126, %127, %cst_48 {dimension_numbers = #tpu.dot_dimension_numbers<[1], [0], [0], [1], [0, 0, 1, 1], [], []>} : vector<8x128xbf16>, vector<128x32xbf16>, vector<8x32xf32> -> vector<8x32xf32>
    %c0_49 = arith.constant 0 : index
    %c0_50 = arith.constant 0 : index
    %129 = vector.load %arg13[%c0_49, %c0_50] : memref<1x32xf32, #tpu.memory_space<vmem>>, vector<1x32xf32>
    %130 = vector.broadcast %129 : vector<1x32xf32> to vector<8x32xf32>
    %131 = arith.addf %128, %130 : vector<8x32xf32>
    %132 = arith.addf %84, %131 : vector<8x32xf32>
    %c0_51 = arith.constant 0 : index
    %c0_52 = arith.constant 0 : index
    %c0_53 = arith.constant 0 : index
    %133 = vector.load %arg14[%c0_51, %c0_52, %c0_53] : memref<1x8x32xf32, #tpu.memory_space<vmem>>, vector<1x8x32xf32>
    %134 = vector.shape_cast %133 : vector<1x8x32xf32> to vector<8x32xf32>
    %135 = vector.shape_cast %132 : vector<8x32xf32> to vector<1x8x32xf32>
    tpu.vector_store %arg14[%c0_51, %c0_52, %c0_53], %135 {strides = array<i32>} : memref<1x8x32xf32, #tpu.memory_space<vmem>>, vector<1x8x32xf32>,
    return
  }
  func.func @transform_0(%arg0: i32) -> (i32, i32, i32) {
    %c0_i32 = arith.constant 0 : i32
    %c0_i32_0 = arith.constant 0 : i32
    %c0_i32_1 = arith.constant 0 : i32
    return %arg0, %c0_i32, %c0_i32_0 : i32, i32, i32
  }
  func.func @transform_1(%arg0: i32) -> (i32, i32) {
    %c0_i32 = arith.constant 0 : i32
    %c0_i32_0 = arith.constant 0 : i32
    %c0_i32_1 = arith.constant 0 : i32
    return %c0_i32, %c0_i32_0 : i32, i32
  }
  func.func @transform_2(%arg0: i32) -> (i32, i32) {
    %c0_i32 = arith.constant 0 : i32
    %c0_i32_0 = arith.constant 0 : i32
    %c0_i32_1 = arith.constant 0 : i32
    return %c0_i32, %c0_i32_0 : i32, i32
  }
  func.func @transform_3(%arg0: i32) -> (i32, i32) {
    %c0_i32 = arith.constant 0 : i32
    %c0_i32_0 = arith.constant 0 : i32
    %c0_i32_1 = arith.constant 0 : i32
    return %c0_i32, %c0_i32_0 : i32, i32
  }
  func.func @transform_4(%arg0: i32) -> (i32, i32) {
    %c0_i32 = arith.constant 0 : i32
    %c0_i32_0 = arith.constant 0 : i32
    %c0_i32_1 = arith.constant 0 : i32
    return %c0_i32, %c0_i32_0 : i32, i32
  }
  func.func @transform_5(%arg0: i32) -> (i32, i32) {
    %c0_i32 = arith.constant 0 : i32
    %c0_i32_0 = arith.constant 0 : i32
    %c0_i32_1 = arith.constant 0 : i32
    return %c0_i32, %c0_i32_0 : i32, i32
  }
  func.func @transform_6(%arg0: i32) -> (i32, i32) {
    %c0_i32 = arith.constant 0 : i32
    %c0_i32_0 = arith.constant 0 : i32
    %c0_i32_1 = arith.constant 0 : i32
    return %c0_i32, %c0_i32_0 : i32, i32
  }
  func.func @transform_7(%arg0: i32) -> (i32, i32) {
    %c0_i32 = arith.constant 0 : i32
    %c0_i32_0 = arith.constant 0 : i32
    %c0_i32_1 = arith.constant 0 : i32
    return %c0_i32, %c0_i32_0 : i32, i32
  }
  func.func @transform_8(%arg0: i32) -> (i32, i32) {
    %c0_i32 = arith.constant 0 : i32
    %c0_i32_0 = arith.constant 0 : i32
    %c0_i32_1 = arith.constant 0 : i32
    return %c0_i32, %c0_i32_0 : i32, i32
  }
  func.func @transform_9(%arg0: i32) -> (i32, i32) {
    %c0_i32 = arith.constant 0 : i32
    %c0_i32_0 = arith.constant 0 : i32
    %c0_i32_1 = arith.constant 0 : i32
    return %c0_i32, %c0_i32_0 : i32, i32
  }
  func.func @transform_10(%arg0: i32) -> (i32, i32) {
    %c0_i32 = arith.constant 0 : i32
    %c0_i32_0 = arith.constant 0 : i32
    %c0_i32_1 = arith.constant 0 : i32
    return %c0_i32, %c0_i32_0 : i32, i32
  }
  func.func @transform_11(%arg0: i32) -> (i32, i32) {
    %c0_i32 = arith.constant 0 : i32
    %c0_i32_0 = arith.constant 0 : i32
    %c0_i32_1 = arith.constant 0 : i32
    return %c0_i32, %c0_i32_0 : i32, i32
  }
  func.func @transform_12(%arg0: i32) -> (i32, i32) {
    %c0_i32 = arith.constant 0 : i32
    %c0_i32_0 = arith.constant 0 : i32
    %c0_i32_1 = arith.constant 0 : i32
    return %c0_i32, %c0_i32_0 : i32, i32
  }
  func.func @transform_13(%arg0: i32) -> (i32, i32, i32) {
    %c0_i32 = arith.constant 0 : i32
    %c0_i32_0 = arith.constant 0 : i32
    %c0_i32_1 = arith.constant 0 : i32
    return %arg0, %c0_i32, %c0_i32_0 : i32, i32, i32
  }
}

</mosaic_0001>

<bundles_post_ra>
// kernel: tpu_custom_call.1
= control target key start
LH: loop header
LB: loop body
LE: loop exit
PB: predicated region body
PF: predicated region fallthrough
CT: control target
= control target key end

     0   :  { %s4000_s0 = inlined_call_operand.hbm [shape: f32[2,8,32], index: 0, kind: input, shape index: {}]   ;;  %s4001_s1 = inlined_call_operand.hbm [shape: f32[1,32], index: 1, kind: input, shape index: {}]   ;;  %s4002_s2 = inlined_call_operand.hbm [shape: f32[1,32], index: 2, kind: input, shape index: {}]   ;;  %s4003_s3 = inlined_call_operand.hbm [shape: bf16[32,96], index: 3, kind: input, shape index: {}]   ;;  %s4004_s4 = inlined_call_operand.hbm [shape: f32[1,96], index: 4, kind: input, shape index: {}]   ;;  %s4005_s5 = inlined_call_operand.hbm [shape: bf16[32,32], index: 5, kind: input, shape index: {}]   ;;  %s4006_s6 = inlined_call_operand.hbm [shape: f32[1,32], index: 6, kind: input, shape index: {}]   ;;  %s4007_s7 = inlined_call_operand.hbm [shape: f32[1,32], index: 7, kind: input, shape index: {}]   ;;  %s4008_s8 = inlined_call_operand.hbm [shape: f32[1,32], index: 8, kind: input, shape index: {}]   ;;  %s4009_s9 = inlined_call_operand.hbm [shape: bf16[32,128], index: 9, kind: input, shape index: {}]   ;;  %s4010_s10 = inlined_call_operand.hbm [shape: f32[1,128], index: 10, kind: input, shape index: {}]   ;;  %s4011_s11 = inlined_call_operand.hbm [shape: bf16[128,32], index: 11, kind: input, shape index: {}]   ;;  %s4012_s12 = inlined_call_operand.hbm [shape: f32[1,32], index: 12, kind: input, shape index: {}]   ;;  %s4013_s13 = inlined_call_operand.hbm [shape: f32[2,8,32], index: 13, kind: output, shape index: {}]  }
   0x1   :  { %4023 = sst [smem:[#allocation34_spill]] %s4000_s0 }
   0x2   :  { %4024 = sst [smem:[#allocation35_spill]] %s4001_s1 }
   0x3   :  { %4025 = sst [smem:[#allocation36_spill]] %s4002_s2 }
   0x4   :  { %4026 = sst [smem:[#allocation37_spill]] %s4003_s3 }
   0x5   :  { %4027 = sst [smem:[#allocation38_spill]] %s4013_s13 }
   0x6   :  { %18 = vsyncpa [#allocation3], 0 }
   0x7   :  { %20 = vsyncpa [#allocation3 + $0x1], 0 }
   0x8   :  { %21 = vsyncpa [#allocation6], 0 }
   0x9   :  { %22 = vsyncpa [#allocation9], 0 }
   0xa   :  { %23 = vsyncpa [#allocation12], 0 }
   0xb   :  { %24 = vsyncpa [#allocation15], 0 }
   0xc   :  { %25 = vsyncpa [#allocation18], 0 }
   0xd   :  { %26 = vsyncpa [#allocation21], 0 }
   0xe   :  { %27 = vsyncpa [#allocation4], 0 }
   0xf   :  { %29 = vsyncpa [#allocation4 + $0x1], 0  ;;  %s3298_s25 = smov 0   ;;  %s3300_s26 = smov 0  }
  0x10   :  { %s3302_s27 = smov 0   ;;  %s3304_s28 = smov 0  }
  0x11 LB: > { %s3199_s29 = smov [#allocation5]   ;;  %s3319_s14 = sadd.s32 4294967295, %s3197_s28   ;;  %s3197_s28 = sphi %s3304_s28, %s4066_s28   ;;  %s3193_s27 = sphi %s3302_s27, %s4065_s27   ;;  %s3189_s26 = sphi %s3300_s26, %s4064_s26   ;;  %s3185_s25 = sphi %s3298_s25, %s4063_s25  }
  0x12   : > { %s357_s30 = sshll.u32 %s3199_s29, 4  ;;  %4028 = sst [smem:[#allocation32_spill]] %s3319_s14  ;;  %s3324_s30 = int_to_ptr.vmem [resolvable:$true] %s357_s30 }
  0x13   : > { %p2319_p0 = scmp.ge.s32.totalorder %s3197_s28, 1  ;;  %p4020_p1 = scmp.eq.s32.totalorder %s3319_s14, 0 }
  0x14   : > { %p344_p2 = scmp.lt.s32.totalorder %s3197_s28, 3  ;;  %s3200_s16 = smov [#allocation8]  }
  0x15   : > { %s378_s17 = sshll.u32 %s3200_s16, 4  ;;  %s3201_s19 = smov [#allocation11]   ;;  %s3333_s17 = int_to_ptr.vmem [resolvable:$true] %s378_s17 }
  0x16   : > { %p3326_p3 = pnand %p2319_p0, %p344_p2  ;;  %s402_s20 = sshll.u32 %s3201_s19, 4  ;;  %s3341_s20 = int_to_ptr.vmem [resolvable:$true] %s402_s20 }
  0x17   : > { %s4032_s1 = sld [smem:[#allocation35_spill]] }
  0x18   : > { %s4029_s15 = scalar_select %p3326_p3, 1, 0 }
  0x19   : > { %p2567_p5 = pneg %p3326_p3 }
  0x1a   : > { %4030 = sst [smem:[#allocation33_spill]] %s4029_s15 }
  0x1b   : > { %p3337_p6 = pnand %p2567_p5, %p4020_p1 }
  0x1d   : > { %s2741_s23 = scalar_lea.hbm %s4032_s1, 16  ;;  %p3351_p8 = pneg %p3337_p6 }
  0x1e   : > { %p2742_p7 = scmp.ne.s32.totalorder %s4032_s1, %s2741_s23  ;;  %p2748_p11 = scmp.lt.u32.totalorder %s2741_s23, %s4032_s1 }
  0x20   : > { %p2744_p9 = pnand %p3351_p8, %p2742_p7 }
  0x22   : > { %p2745_p10 = pneg %p2744_p9 }
  0x24   : > { %p2750_p12 = pnand %p2748_p11, %p2745_p10 }
  0x26   : > { %2753 = shalt.err (!%p2750_p12)
}
  0x27   : > { %s2754_s21 = scalar_lea.vmem %s3324_s30, 16  ;;  %s2761_s22 = scalar_lea.vmem %s3324_s30, 32 }
  0x28   : > { %p2755_p13 = scmp.ne.s32.totalorder %s3324_s30, %s2754_s21  ;;  %p2762_p5 = scmp.lt.s32.totalorder %s3324_s30, %s3324_s30 }
  0x29   : > { %p2763_p7 = scmp.lt.s32.totalorder %s2761_s22, %s2754_s21 }
  0x2a   : > { %p2757_p0 = pnand %p2755_p13, %p3351_p8 }
  0x2b   : > { %p2764_p9 = por %p2763_p7, %p2762_p5 }
  0x2c   : > { %p2758_p2 = pneg %p2757_p0 }
  0x2e   : > { %p2765_p4 = pnand %p2764_p9, %p2758_p2 }
  0x30   : > { %2768 = shalt.err (!%p2765_p4)
}
  0x31   : > { %2570 = dma.hbm_to_vmem [thread:$0]  (!%p3337_p6), %s4032_s1, 16, %s3324_s30, [#allocation6]  }
  0x32   : > { %s4034_s3 = sld [smem:[#allocation37_spill]] }
  0x38   : > { %s2769_s19 = scalar_lea.hbm %s4034_s3, 256 }
  0x39   : > { %p2770_p10 = scmp.ne.s32.totalorder %s4034_s3, %s2769_s19  ;;  %p2776_p4 = scmp.lt.u32.totalorder %s2769_s19, %s4034_s3 }
  0x3b   : > { %p2772_p11 = pnand %p2770_p10, %p3351_p8 }
  0x3d   : > { %p2773_p12 = pneg %p2772_p11 }
  0x3f   : > { %p2778_p13 = pnand %p2776_p4, %p2773_p12 }
  0x41   : > { %2781 = shalt.err (!%p2778_p13)
}
  0x42   : > { %s2782_s30 = scalar_lea.vmem %s3333_s17, 256  ;;  %p2790_p7 = scmp.lt.s32.totalorder %s3333_s17, %s3333_s17 }
  0x43   : > { %p2783_p0 = scmp.ne.s32.totalorder %s3333_s17, %s2782_s30  ;;  %p2791_p9 = scmp.lt.s32.totalorder %s2782_s30, %s2782_s30 }
  0x45   : > { %p2785_p2 = pnand %p2783_p0, %p3351_p8  ;;  %p2792_p10 = por %p2791_p9, %p2790_p7 }
  0x47   : > { %p2786_p5 = pneg %p2785_p2 }
  0x49   : > { %p2793_p11 = pnand %p2792_p10, %p2786_p5 }
  0x4b   : > { %2796 = shalt.err (!%p2793_p11)
}
  0x4c   : > { %s3202_s0 = smov 64   ;;  %s3203_s15 = smov 4  }
  0x4d   : > { %2576 = dma.hbm_to_vmem [thread:$0]  (!%p3337_p6), %s4034_s3, 256, %s3333_s17, [#allocation9], %s3202_s0, %s3202_s0, %s3203_s15  }
  0x4e   : > { %s2797_s19 = scalar_lea.hbm %s4005_s5, 256 }
  0x4f   : > { %p2798_p12 = scmp.ne.s32.totalorder %s4005_s5, %s2797_s19  ;;  %p2804_p0 = scmp.lt.u32.totalorder %s2797_s19, %s4005_s5 }
  0x51   : > { %p2800_p4 = pnand %p2798_p12, %p3351_p8 }
  0x53   : > { %p2801_p13 = pneg %p2800_p4 }
  0x55   : > { %p2806_p2 = pnand %p2804_p0, %p2801_p13 }
  0x57   : > { %2809 = shalt.err (!%p2806_p2)
}
  0x58   : > { %s2810_s17 = scalar_lea.vmem %s3341_s20, 256  ;;  %p2818_p10 = scmp.lt.s32.totalorder %s3341_s20, %s3341_s20 }
  0x59   : > { %p2811_p5 = scmp.ne.s32.totalorder %s3341_s20, %s2810_s17  ;;  %p2819_p11 = scmp.lt.s32.totalorder %s2810_s17, %s2810_s17 }
  0x5b   : > { %p2813_p7 = pnand %p2811_p5, %p3351_p8  ;;  %p2820_p12 = por %p2819_p11, %p2818_p10 }
  0x5d   : > { %p2814_p9 = pneg %p2813_p7 }
  0x5f   : > { %p2821_p4 = pnand %p2820_p12, %p2814_p9 }
  0x61   : > { %2824 = shalt.err (!%p2821_p4)
}
  0x62   : > { %2582 = dma.hbm_to_vmem [thread:$0]  (!%p3337_p6), %s4005_s5, 256, %s3341_s20, [#allocation12], %s3202_s0, %s3202_s0, %s3203_s15  }
  0x63   : > { %s3204_s23 = smov [#allocation14]   ;;  %s3205_s29 = smov [#allocation17]  }
  0x64   : > { %s427_s24 = sshll.u32 %s3204_s23, 4  ;;  %s448_s19 = sshll.u32 %s3205_s29, 4  ;;  %s428_s24 = int_to_ptr.vmem [resolvable:$true] %s427_s24  ;;  %s449_s19 = int_to_ptr.vmem [resolvable:$true] %s448_s19 }
  0x65   : > { %s2825_s30 = scalar_lea.hbm %s4007_s7, 16 }
  0x66   : > { %p2826_p13 = scmp.ne.s32.totalorder %s4007_s7, %s2825_s30  ;;  %p2832_p5 = scmp.lt.u32.totalorder %s2825_s30, %s4007_s7 }
  0x68   : > { %p2828_p0 = pnand %p2826_p13, %p3351_p8 }
  0x6a   : > { %p2829_p2 = pneg %p2828_p0 }
  0x6c   : > { %p2834_p7 = pnand %p2832_p5, %p2829_p2 }
  0x6e   : > { %2837 = shalt.err (!%p2834_p7)
}
  0x6f   : > { %s2838_s20 = scalar_lea.vmem %s428_s24, 16  ;;  %s2845_s13 = scalar_lea.vmem %s428_s24, 32 }
  0x70   : > { %p2839_p9 = scmp.ne.s32.totalorder %s428_s24, %s2838_s20  ;;  %p2846_p12 = scmp.lt.s32.totalorder %s428_s24, %s428_s24 }
  0x71   : > { %p2847_p4 = scmp.lt.s32.totalorder %s2845_s13, %s2838_s20 }
  0x72   : > { %p2841_p10 = pnand %p2839_p9, %p3351_p8 }
  0x73   : > { %p2848_p1 = por %p2847_p4, %p2846_p12 }
  0x74   : > { %p2842_p11 = pneg %p2841_p10 }
  0x76   : > { %p2849_p3 = pnand %p2848_p1, %p2842_p11 }
  0x78   : > { %2852 = shalt.err (!%p2849_p3)
}
  0x79   : > { %2588 = dma.hbm_to_vmem [thread:$0]  (!%p3337_p6), %s4007_s7, 16, %s428_s24, [#allocation15]  }
  0x7a   : > { %s2853_s21 = scalar_lea.hbm %s4009_s9, 256 }
  0x7b   : > { %p2854_p13 = scmp.ne.s32.totalorder %s4009_s9, %s2853_s21  ;;  %p2860_p3 = scmp.lt.u32.totalorder %s2853_s21, %s4009_s9 }
  0x7d   : > { %p2856_p0 = pnand %p2854_p13, %p3351_p8 }
  0x7f   : > { %p2857_p1 = pneg %p2856_p0 }
  0x81   : > { %p2862_p2 = pnand %p2860_p3, %p2857_p1 }
  0x83   : > { %2865 = shalt.err (!%p2862_p2)
}
  0x84   : > { %s2866_s20 = scalar_lea.vmem %s449_s19, 256  ;;  %p2874_p10 = scmp.lt.s32.totalorder %s449_s19, %s449_s19 }
  0x85   : > { %p2867_p5 = scmp.ne.s32.totalorder %s449_s19, %s2866_s20  ;;  %p2875_p11 = scmp.lt.s32.totalorder %s2866_s20, %s2866_s20 }
  0x87   : > { %p2869_p7 = pnand %p2867_p5, %p3351_p8  ;;  %p2876_p12 = por %p2875_p11, %p2874_p10 }
  0x89   : > { %p2870_p9 = pneg %p2869_p7 }
  0x8b   : > { %p2877_p4 = pnand %p2876_p12, %p2870_p9 }
  0x8d   : > { %2880 = shalt.err (!%p2877_p4)
}
  0x8e   : > { %2594 = dma.hbm_to_vmem [thread:$0]  (!%p3337_p6), %s4009_s9, 256, %s449_s19, [#allocation18], %s3202_s0, %s3202_s0, %s3203_s15  }
  0x8f   : > { %s3206_s3 = smov [#allocation20]   ;;  %s3207_s14 = smov [#allocation7]  }
  0x90   : > { %s472_s23 = sshll.u32 %s3206_s3, 4  ;;  %s368_s29 = sshll.u32 %s3207_s14, 4  ;;  %s473_s23 = int_to_ptr.vmem [resolvable:$true] %s472_s23  ;;  %s369_s29 = int_to_ptr.vmem [resolvable:$true] %s368_s29 }
  0x91   : > { %s2881_s30 = scalar_lea.hbm %s4011_s11, 1024 }
  0x92   : > { %p2882_p13 = scmp.ne.s32.totalorder %s4011_s11, %s2881_s30  ;;  %p2888_p3 = scmp.lt.u32.totalorder %s2881_s30, %s4011_s11 }
  0x94   : > { %p2884_p0 = pnand %p2882_p13, %p3351_p8 }
  0x96   : > { %p2885_p1 = pneg %p2884_p0 }
  0x98   : > { %p2890_p2 = pnand %p2888_p3, %p2885_p1 }
  0x9a   : > { %2893 = shalt.err (!%p2890_p2)
}
  0x9b   : > { %s2894_s19 = scalar_lea.vmem %s473_s23, 1024  ;;  %p2902_p10 = scmp.lt.s32.totalorder %s473_s23, %s473_s23 }
  0x9c   : > { %p2895_p5 = scmp.ne.s32.totalorder %s473_s23, %s2894_s19  ;;  %p2903_p11 = scmp.lt.s32.totalorder %s2894_s19, %s2894_s19 }
  0x9e   : > { %p2897_p7 = pnand %p2895_p5, %p3351_p8  ;;  %p2904_p12 = por %p2903_p11, %p2902_p10 }
  0xa0   : > { %p2898_p9 = pneg %p2897_p7 }
  0xa2   : > { %p2905_p4 = pnand %p2904_p12, %p2898_p9 }
  0xa4   : > { %2908 = shalt.err (!%p2905_p4)
}
  0xa5   : > { %2600 = dma.hbm_to_vmem [thread:$0]  (!%p3337_p6), %s4011_s11, 1024, %s473_s23, [#allocation21], %s3202_s0, %s3202_s0, %s3203_s15  }
  0xa6   : > { %s4035_s2 = sld [smem:[#allocation36_spill]] }
  0xac   : > { %s2909_s22 = scalar_lea.hbm %s4035_s2, 16 }
  0xad   : > { %p2910_p13 = scmp.ne.s32.totalorder %s4035_s2, %s2909_s22  ;;  %p2916_p3 = scmp.lt.u32.totalorder %s2909_s22, %s4035_s2 }
  0xaf   : > { %p2912_p0 = pnand %p2910_p13, %p3351_p8 }
  0xb1   : > { %p2913_p1 = pneg %p2912_p0 }
  0xb3   : > { %p2918_p2 = pnand %p2916_p3, %p2913_p1 }
  0xb5   : > { %2921 = shalt.err (!%p2918_p2)
}
  0xb6   : > { %s2922_s24 = scalar_lea.vmem %s369_s29, 16  ;;  %s2929_s0 = scalar_lea.vmem %s369_s29, 32 }
  0xb7   : > { %p2923_p5 = scmp.ne.s32.totalorder %s369_s29, %s2922_s24  ;;  %p2930_p10 = scmp.lt.s32.totalorder %s369_s29, %s369_s29 }
  0xb8   : > { %p2931_p11 = scmp.lt.s32.totalorder %s2929_s0, %s2922_s24 }
  0xb9   : > { %p2925_p7 = pnand %p2923_p5, %p3351_p8 }
  0xba   : > { %p2932_p12 = por %p2931_p11, %p2930_p10 }
  0xbb   : > { %p2926_p9 = pneg %p2925_p7 }
  0xbd   : > { %p2933_p4 = pnand %p2932_p12, %p2926_p9 }
  0xbf   : > { %2936 = shalt.err (!%p2933_p4)
}
  0xc0   : > { %2573 = dma.hbm_to_vmem [thread:$0]  (!%p3337_p6), %s4035_s2, 16, %s369_s29, [#allocation6]  }
  0xc1   : > { %s3208_s19 = smov [#allocation10]   ;;  %s3209_s3 = smov [#allocation13]  }
  0xc2   : > { %s392_s13 = sshll.u32 %s3208_s19, 4  ;;  %s416_s14 = sshll.u32 %s3209_s3, 4  ;;  %s393_s13 = int_to_ptr.vmem [resolvable:$true] %s392_s13  ;;  %s417_s14 = int_to_ptr.vmem [resolvable:$true] %s416_s14 }
  0xc3   : > { %s2937_s30 = scalar_lea.hbm %s4004_s4, 16 }
  0xc4   : > { %p2938_p13 = scmp.ne.s32.totalorder %s4004_s4, %s2937_s30  ;;  %p2944_p3 = scmp.lt.u32.totalorder %s2937_s30, %s4004_s4 }
  0xc6   : > { %p2940_p0 = pnand %p2938_p13, %p3351_p8 }
  0xc8   : > { %p2941_p1 = pneg %p2940_p0 }
  0xca   : > { %p2946_p2 = pnand %p2944_p3, %p2941_p1 }
  0xcc   : > { %2949 = shalt.err (!%p2946_p2)
}
  0xcd   : > { %s2950_s29 = scalar_lea.vmem %s393_s13, 16  ;;  %s2957_s0 = scalar_lea.vmem %s393_s13, 32 }
  0xce   : > { %p2951_p5 = scmp.ne.s32.totalorder %s393_s13, %s2950_s29  ;;  %p2958_p10 = scmp.lt.s32.totalorder %s393_s13, %s393_s13 }
  0xcf   : > { %p2959_p11 = scmp.lt.s32.totalorder %s2957_s0, %s2950_s29 }
  0xd0   : > { %p2953_p7 = pnand %p2951_p5, %p3351_p8 }
  0xd1   : > { %p2960_p12 = por %p2959_p11, %p2958_p10 }
  0xd2   : > { %p2954_p9 = pneg %p2953_p7 }
  0xd4   : > { %p2961_p4 = pnand %p2960_p12, %p2954_p9 }
  0xd6   : > { %2964 = shalt.err (!%p2961_p4)
}
  0xd7   : > { %2579 = dma.hbm_to_vmem [thread:$0]  (!%p3337_p6), %s4004_s4, 16, %s393_s13, [#allocation9]  }
  0xd8   : > { %s2965_s21 = scalar_lea.hbm %s4006_s6, 16 }
  0xd9   : > { %p2966_p13 = scmp.ne.s32.totalorder %s4006_s6, %s2965_s21  ;;  %p2972_p3 = scmp.lt.u32.totalorder %s2965_s21, %s4006_s6 }
  0xdb   : > { %p2968_p0 = pnand %p2966_p13, %p3351_p8 }
  0xdd   : > { %p2969_p1 = pneg %p2968_p0 }
  0xdf   : > { %p2974_p2 = pnand %p2972_p3, %p2969_p1 }
  0xe1   : > { %2977 = shalt.err (!%p2974_p2)
}
  0xe2   : > { %s2978_s20 = scalar_lea.vmem %s417_s14, 16  ;;  %s2985_s13 = scalar_lea.vmem %s417_s14, 32 }
  0xe3   : > { %p2979_p5 = scmp.ne.s32.totalorder %s417_s14, %s2978_s20  ;;  %p2986_p10 = scmp.lt.s32.totalorder %s417_s14, %s417_s14 }
  0xe4   : > { %p2987_p11 = scmp.lt.s32.totalorder %s2985_s13, %s2978_s20 }
  0xe5   : > { %p2981_p7 = pnand %p2979_p5, %p3351_p8 }
  0xe6   : > { %p2988_p12 = por %p2987_p11, %p2986_p10 }
  0xe7   : > { %p2982_p9 = pneg %p2981_p7 }
  0xe9   : > { %p2989_p4 = pnand %p2988_p12, %p2982_p9 }
  0xeb   : > { %2992 = shalt.err (!%p2989_p4)
}
  0xec   : > { %2585 = dma.hbm_to_vmem [thread:$0]  (!%p3337_p6), %s4006_s6, 16, %s417_s14, [#allocation12]  }
  0xed   : > { %s3210_s0 = smov [#allocation16]   ;;  %s3211_s23 = smov [#allocation19]  }
  0xee   : > { %s438_s15 = sshll.u32 %s3210_s0, 4  ;;  %s462_s19 = sshll.u32 %s3211_s23, 4  ;;  %s439_s15 = int_to_ptr.vmem [resolvable:$true] %s438_s15  ;;  %s463_s19 = int_to_ptr.vmem [resolvable:$true] %s462_s19 }
  0xef   : > { %s2993_s22 = scalar_lea.hbm %s4008_s8, 16 }
  0xf0   : > { %p2994_p13 = scmp.ne.s32.totalorder %s4008_s8, %s2993_s22  ;;  %p3000_p3 = scmp.lt.u32.totalorder %s2993_s22, %s4008_s8 }
  0xf2   : > { %p2996_p0 = pnand %p2994_p13, %p3351_p8 }
  0xf4   : > { %p2997_p1 = pneg %p2996_p0 }
  0xf6   : > { %p3002_p2 = pnand %p3000_p3, %p2997_p1 }
  0xf8   : > { %3005 = shalt.err (!%p3002_p2)
}
  0xf9   : > { %s3006_s14 = scalar_lea.vmem %s439_s15, 16  ;;  %s3013_s13 = scalar_lea.vmem %s439_s15, 32 }
  0xfa   : > { %p3007_p5 = scmp.ne.s32.totalorder %s439_s15, %s3006_s14  ;;  %p3014_p10 = scmp.lt.s32.totalorder %s439_s15, %s439_s15 }
  0xfb   : > { %p3015_p11 = scmp.lt.s32.totalorder %s3013_s13, %s3006_s14 }
  0xfc   : > { %p3009_p7 = pnand %p3007_p5, %p3351_p8 }
  0xfd   : > { %p3016_p12 = por %p3015_p11, %p3014_p10 }
  0xfe   : > { %p3010_p9 = pneg %p3009_p7 }
 0x100   : > { %p3017_p4 = pnand %p3016_p12, %p3010_p9 }
 0x102   : > { %3020 = shalt.err (!%p3017_p4)
}
 0x103   : > { %2591 = dma.hbm_to_vmem [thread:$0]  (!%p3337_p6), %s4008_s8, 16, %s439_s15, [#allocation15]  }
 0x104   : > { %s3021_s3 = scalar_lea.hbm %s4010_s10, 16 }
 0x105   : > { %p3022_p13 = scmp.ne.s32.totalorder %s4010_s10, %s3021_s3  ;;  %p3028_p3 = scmp.lt.u32.totalorder %s3021_s3, %s4010_s10 }
 0x107   : > { %p3024_p0 = pnand %p3022_p13, %p3351_p8 }
 0x109   : > { %p3025_p1 = pneg %p3024_p0 }
 0x10b   : > { %p3030_p2 = pnand %p3028_p3, %p3025_p1 }
 0x10d   : > { %3033 = shalt.err (!%p3030_p2)
}
 0x10e   : > { %s3034_s1 = scalar_lea.vmem %s463_s19, 16  ;;  %s3041_s15 = scalar_lea.vmem %s463_s19, 32 }
 0x10f   : > { %p3035_p5 = scmp.ne.s32.totalorder %s463_s19, %s3034_s1  ;;  %p3042_p10 = scmp.lt.s32.totalorder %s463_s19, %s463_s19 }
 0x110   : > { %p3043_p11 = scmp.lt.s32.totalorder %s3041_s15, %s3034_s1 }
 0x111   : > { %p3037_p7 = pnand %p3035_p5, %p3351_p8 }
 0x112   : > { %p3044_p12 = por %p3043_p11, %p3042_p10 }
 0x113   : > { %p3038_p9 = pneg %p3037_p7 }
 0x115   : > { %p3045_p4 = pnand %p3044_p12, %p3038_p9 }
 0x117   : > { %3048 = shalt.err (!%p3045_p4)
}
 0x118   : > { %2597 = dma.hbm_to_vmem [thread:$0]  (!%p3337_p6), %s4010_s10, 16, %s463_s19, [#allocation18]  }
 0x119   : > { %s3212_s13 = smov [#allocation22]   ;;  %s3049_s23 = scalar_lea.hbm %s4012_s12, 16 }
 0x11a   : > { %s486_s24 = sshll.u32 %s3212_s13, 4  ;;  %p3050_p13 = scmp.ne.s32.totalorder %s4012_s12, %s3049_s23  ;;  %s487_s24 = int_to_ptr.vmem [resolvable:$true] %s486_s24 }
 0x11b   : > { %p3056_p3 = scmp.lt.u32.totalorder %s3049_s23, %s4012_s12 }
 0x11c   : > { %p3052_p0 = pnand %p3050_p13, %p3351_p8 }
 0x11e   : > { %p3053_p1 = pneg %p3052_p0 }
 0x120   : > { %p3058_p2 = pnand %p3056_p3, %p3053_p1 }
 0x122   : > { %3061 = shalt.err (!%p3058_p2)
}
 0x123   : > { %s3062_s19 = scalar_lea.vmem %s487_s24, 16  ;;  %s3069_s17 = scalar_lea.vmem %s487_s24, 32 }
 0x124   : > { %p3063_p5 = scmp.ne.s32.totalorder %s487_s24, %s3062_s19  ;;  %p3070_p10 = scmp.lt.s32.totalorder %s487_s24, %s487_s24 }
 0x125   : > { %p3071_p11 = scmp.lt.s32.totalorder %s3069_s17, %s3062_s19 }
 0x126   : > { %p3065_p7 = pnand %p3063_p5, %p3351_p8 }
 0x127   : > { %p3072_p12 = por %p3071_p11, %p3070_p10 }
 0x128   : > { %p3066_p9 = pneg %p3065_p7 }
 0x12a   : > { %p3073_p4 = pnand %p3072_p12, %p3066_p9 }
 0x12c   : > { %3076 = shalt.err (!%p3073_p4)
}
 0x12d   : > { %s4036_s16 = sld [smem:[#allocation32_spill]]  ;;  %s2318_s20 = sadd.s32 4294967294, %s3197_s28  }
 0x12e   : > { %2603 = dma.hbm_to_vmem [thread:$0]  (!%p3337_p6), %s4012_s12, 16, %s487_s24, [#allocation21]  }
 0x12f   : > { %s3595_s18 = sadd.s32 1, %s3197_s28   ;;  %s42_s13 = sadd.s32 1, %s3193_s27 }
 0x130   : > { %s39_s14 = ssub.s32 %s3197_s28, %s3595_s18  ;;  %p49_p13 = scmp.ne.s32.totalorder %s3193_s27, %s3189_s26 }
 0x131   : > { %p40_p8 = scmp.eq.s32.totalorder %s39_s14, 0  ;;  %p50_p0 = scmp.eq.s32.totalorder %s3197_s28, 0 }
 0x132   : > { %p55_p1 = scmp.ne.s32.totalorder %s3189_s26, %s3185_s25  ;;  %p337_p7 = scmp.eq.s32.totalorder %s2318_s20, 1 }
 0x133   : > { %s3606_s29 = scalar_select %p40_p8, %s3193_s27, %s42_s13  }
 0x134   : > { %p3608_p3 = por %p50_p0, %p49_p13  ;;  %p4038_p2 = scmp.eq.s32.totalorder %s4036_s16, 0 }
 0x135   : > { %p331_p5 = scmp.eq.s32.totalorder %s4036_s16, 1  ;;  %p2624_p9 = scmp.lt.s32.totalorder %s3197_s28, 2 }
 0x136   : > { %p3614_p6 = por %p4038_p2, %p55_p1  ;;  %s497_s23 = sand.u32 1, %s3193_s27  }
 0x137   : > { %p3621_p10 = por %p331_p5, %p49_p13  ;;  %p3625_p11 = por %p337_p7, %p55_p1 }
 0x138   : > { %s2333_s22 = sshll.u32 %s497_s23, 3  ;;  %s2334_s30 = sshll.u32 %s3197_s28, 7 }
 0x139   : > { %s4040_s3 = scalar_select %p3621_p10, 1, 0 }
 0x13a   : > { %s4041_s21 = scalar_select %p3625_p11, 1, 0 }
 0x13b   : > { %s4042_s1 = sld [smem:[#allocation34_spill]]  ;;  %s501_s16 = scalar_lea.vmem [#allocation2], %s2333_s22 }
 0x13c   : > { %s508_s20 = sshll.u32 %s501_s16, 4  ;;  %p3639_p12 = pnand %p2624_p9, %p3608_p3  ;;  %s3635_s20 = int_to_ptr.vmem [resolvable:$true] %s508_s20 }
 0x13d   : > { %s498_s13 = scalar_lea.sflag [#allocation3], %s497_s23 }
 0x13e   : > { %p3079_p8 = pneg %p3639_p12 }
 0x141   : > { %s3633_s15 = scalar_lea.hbm %s4042_s1, %s2334_s30  ;;  %s3082_s19 = scalar_lea.hbm %s4042_s1, 256 }
 0x142   : > { %s3077_s2 = scalar_lea.hbm %s3633_s15, 128  ;;  %p3083_p1 = scmp.lt.u32.totalorder %s3633_s15, %s4042_s1 }
 0x143   : > { %p3078_p4 = scmp.ne.s32.totalorder %s3633_s15, %s3077_s2  ;;  %p3084_p3 = scmp.lt.u32.totalorder %s3082_s19, %s3077_s2 }
 0x144   : > { %p3086_p5 = scmp.lt.u32.totalorder %s3077_s2, %s3633_s15 }
 0x145   : > { %p3080_p13 = pnand %p3079_p8, %p3078_p4  ;;  %p3085_p2 = por %p3084_p3, %p3083_p1 }
 0x147   : > { %p3081_p0 = pneg %p3080_p13  ;;  %p3087_p7 = por %p3086_p5, %p3085_p2 }
 0x149   : > { %p3088_p9 = pnand %p3087_p7, %p3081_p0 }
 0x14b   : > { %3091 = shalt.err (!%p3088_p9)
}
 0x14c   : > { %s3092_s23 = scalar_lea.vmem %s3635_s20, 128  ;;  %s3213_s16 = smov [#allocation2]  }
 0x14d   : > { %p3093_p4 = scmp.ne.s32.totalorder %s3635_s20, %s3092_s23  ;;  %s3097_s22 = sshll.u32 %s3213_s16, 4  ;;  %s3098_s22 = int_to_ptr.vmem [resolvable:$false] %s3097_s22 }
 0x14e   : > { %s3099_s30 = scalar_lea.vmem %s3098_s22, 256  ;;  %p3100_p10 = scmp.lt.s32.totalorder %s3635_s20, %s3098_s22 }
 0x14f   : > { %p3095_p13 = pnand %p3093_p4, %p3079_p8  ;;  %p3101_p1 = scmp.lt.s32.totalorder %s3099_s30, %s3092_s23 }
 0x151   : > { %p3096_p11 = pneg %p3095_p13  ;;  %p3102_p3 = por %p3101_p1, %p3100_p10 }
 0x153   : > { %p3103_p2 = pnand %p3102_p3, %p3096_p11 }
 0x155   : > { %3106 = shalt.err (!%p3103_p2)
}
 0x156   : > { %2607 = dma.hbm_to_vmem [thread:$0]  (!%p3639_p12), %s3633_s15, 128, %s3635_s20, %s498_s13  }
 0x157   : > { %s4044_s2 = sld [smem:[#allocation33_spill]] }
 0x15d   : > { %p4045_p0 = scmp.ne.s32.totalorder %s4044_s2, 0 }
 0x15e   : > { %s3671_s19 = sand.u32 (!%p4045_p0), 1, %s3189_s26  }
 0x15f   : > { %517 = sbr.rel (%p4045_p0) target bundleno = 2979 (0xba3), region = 72  ;;  %s2336_s0 = sshll.u32 (!%p4045_p0), %s3671_s19, 3 }
 0x160   : > { %s520_s17 = scalar_lea.sflag (!%p4045_p0), [#allocation3], %s3671_s19  ;;  %s523_s23 = scalar_lea.vmem (!%p4045_p0), [#allocation2], %s2336_s0 }
 0x166   : > { %3152 = dma.done.wait (%p3614_p6), %s520_s17, 128  }
 0x167   : > { %3154 = vsyncadd (%p3614_p6), %s520_s17, 4294967168  ;;  %s4046_s15 = sld [smem:[#allocation32_spill]] }
 0x16d   : > { %p4047_p10 = scmp.eq.s32.totalorder %s4046_s15, 0 }
 0x16f   : > { %3156 = dma.done.wait (%p4047_p10), [#allocation6], 32   ;;  %p4048_p11 = pmov %p4047_p10 }
 0x170   : > { %p4049_p12 = pmov %p4047_p10 }
 0x171   : > { %3158 = vsyncadd (%p4048_p11), [#allocation6], 4294967264 }
 0x172   : > { %3160 = dma.done.wait (%p4049_p12), [#allocation9], 272   ;;  %p4050_p8 = pmov %p4047_p10 }
 0x174   : > { %3162 = vsyncadd (%p4050_p8), [#allocation9], 4294967024  ;;  %p4051_p5 = pmov %p4050_p8 }
 0x176   : > { %3164 = dma.done.wait (%p4051_p5), [#allocation12], 272   ;;  %p4052_p7 = pmov %p4051_p5 }
 0x177   : > { %p4053_p6 = pmov %p4051_p5 }
 0x178   : > { %3166 = vsyncadd (%p4052_p7), [#allocation12], 4294967024 }
 0x179   : > { %3168 = dma.done.wait (%p4053_p6), [#allocation15], 32   ;;  %p4054_p9 = pmov %p4051_p5 }
 0x17a   : > { %p4055_p4 = pmov %p4051_p5 }
 0x17b   : > { %3170 = vsyncadd (%p4054_p9), [#allocation15], 4294967264 }
 0x17c   : > { %3172 = dma.done.wait (%p4055_p4), [#allocation18], 272   ;;  %p4056_p13 = pmov %p4055_p4 }
 0x17d   : > { %p4057_p1 = pmov %p4055_p4 }
 0x17e   : > { %3174 = vsyncadd (%p4056_p13), [#allocation18], 4294967024 }
 0x17f   : > { %3176 = dma.done.wait (%p4057_p1), [#allocation21], 1040   ;;  %p4058_p3 = pmov %p4057_p1 }
 0x180   : > { %vm618_vm0 = vcmask 261120   ;;  %v3705_v0 = vld [vmem:[%s523_s23] sm:$0xff]  ;;  %v2697_v7 = vld [vmem:[#allocation8] sm:$0xff]   ;;  %v3214_v8 = vmov 0.0   ;;  %vm3215_vm1 = vmmov 0   ;;  %s3216_s24 = smov 104   ;;  %v725_v32 = vlaneseq }
 0x181   : > { %3178 = vsyncadd (%p4058_p3), [#allocation21], 4294966256  ;;  %v619_v1 = vsel %vm618_vm0, %v3705_v0, 0.0  ;;  %2423 = vmatprep.subr.bf16.mxu0 %v3214_v8  ;;  %2427 = vmatprep.mubr.msk.bf16.mxu0 %vm3215_vm1, %v3214_v8  ;;  %v2698_v9 = vld [vmem:[#allocation8 + $0x8] sm:$0xff]   ;;  %v2350_v14 = vld [vmem:[#allocation5] ss:$0 sm:$0xff] }
 0x182   : > { %620 = vadd.xlane.f32.xlu0 %v619_v1  ;;  %2424 = vmatpush3.bf16.msra.mxu0 %v2697_v7  ;;  %v2351_v16 = vld [vmem:[#allocation7] ss:$0 sm:$0xff]  ;;  %v2352_v20 = vld [vmem:[#allocation10] ss:$0 sm:$0xff]  ;;  %s3217_s20 = smov 120   ;;  %s3218_s14 = smov 112  }
 0x183   : > { %2443 = vmatprep.subr.bf16.mxu1 %v3214_v8  ;;  %2425 = vmatprep.subr.bf16.mxu0 %v3214_v8  ;;  %s3219_s13 = smov 96   ;;  %s3220_s16 = smov 64   ;;  %v3221_v30 = vmov 1983009808   ;;  %v3733_v34 = vshrl.u32 %v725_v32, 7  ;;  %v3223_v57 = vmov 0  }
 0x184   : > { %2445 = vmatprep.mubr.msk.bf16.mxu1 %vm3215_vm1, %v3214_v8  ;;  %v723_v31 = vunpack.c.l.s4 %v3221_v30  ;;  %v3222_v35 = vmov 1934713408   ;;  %vm1227_vm2 = vcmask 64512   ;;  %vm1486_vm4 = vcmask 1043456   ;;  %s3224_s22 = smov 16   ;;  %s3225_s30 = smov 8  }
 0x185   : > { %v740_v36 = vunpack.c.l.s4 %v3222_v35  ;;  %s3226_s2 = smov 24   ;;  %vm1829_vm5 = vcmask 130048   ;;  %vm1831_vm6 = vcmask 195584   ;;  %s2386_s17 = sshll.u32 %s4046_s15, 7 }
 0x186   : > { %2426 = vmatpush3.bf16.msra.mxu0 %v2698_v9  ;;  %v724_v33 = vunpack.c.0.s8 %v723_v31  ;;  %s613_s23 = scalar_lea.vmem [#allocation23], %s2336_s0  ;;  %s2121_s0 = scalar_lea.sflag [#allocation4], %s3671_s19 }
 0x187   : > { %2431 = vmatprep.subr.bf16.mxu0 %v3214_v8  ;;  %v741_v40 = vunpack.c.0.s8 %v740_v36  ;;  %p4060_p0 = scmp.ne.s32.totalorder %s4040_s3, 0 }
 0x188   : > { %v3736_v37 = vsub.s32 %v724_v33, %v3733_v34 }
 0x189   : > { %v3746_v46 = vsub.s32 %v741_v40, %v3733_v34 }
 0x20f   : > { %v621_v2 = vpop.xlane.xlu0 %620 }
 0x210   : > { %v623_v3 = vmul.f32 0.03125, %v621_v2 }
 0x212   : > { %v624_v4 = vsub.f32 %v3705_v0, %v623_v3 }
 0x214   : > { %v625_v5 = vmul.f32 %v624_v4, %v624_v4 }
 0x216   : > { %v626_v6 = vsel %vm618_vm0, %v625_v5, 0.0 }
 0x217   : > { %627 = vadd.xlane.f32.xlu0 %v626_v6 }
 0x2a4   : > { %v628_v10 = vpop.xlane.xlu0 %627 }
 0x2a5   : > { %v629_v11 = vmul.f32 0.03125, %v628_v10 }
 0x2a7   : > { %v630_v12 = vadd.f32 1e-05, %v629_v11 }
 0x2a9   : > { %2711 = vrsqrt.f32 %v630_v12 }
 0x2b3   : > { %v2712_v13 = vpop.eup %2711 }
 0x2b4   : > { %v632_v15 = vmul.f32 %v2712_v13, %v624_v4 }
 0x2b6   : > { %v639_v17 = vmul.f32 %v2350_v14, %v632_v15 }
 0x2b8   : > { %v646_v18 = vadd.f32 %v2351_v16, %v639_v17 }
 0x2ba   : > { %v647_v19 = vpack.c.bf16 %v646_v18, %v646_v18 }
 0x2bc   : > { %2428 = vmatmul.mubr.msk.bf16.vlgmr.msra.gmra.mrb[0].mxu0 %vm618_vm0, %v647_v19 }
 0x2bd   : > { %2433 = vmatprep.mubr.msk.bf16.mxu0 %vm3215_vm1, %v3214_v8 }
 0x38f   : > { %v708_v21 = vpop.f32.mrb[0].mxu0 }
 0x390   : > { %v709_v22 = vadd.f32 %v2352_v20, %v708_v21  ;;  %v2429_v23 = vpop.f32.mrb[1].mxu0 }
 0x391   : > { %v711_v24 = vpop.f32.mrb[2].mxu0 }
 0x392   : > { %v714_v25 = vpack.c.bf16 %v709_v22, %v709_v22  ;;  %v2430_v26 = vpop.f32.mrb[3].mxu0 }
 0x394   : > { %720 = vrot.lane.b32.xlu0 %v714_v25, %s3216_s24  ;;  %716 = vrot.lane.b32.xlu1 %v714_v25, %s3217_s20  ;;  %v728_v43 = vrot.slane %v714_v25, %v3736_v37  ;;  %s2134_s24 = sshll.u32 %s613_s23, 4  ;;  %s3957_s24 = int_to_ptr.vmem [resolvable:$true] %s2134_s24 }
 0x395   : > { %s3107_s15 = scalar_lea.vmem %s3957_s24, 128 }
 0x396   : > { %p3108_p2 = scmp.ne.s32.totalorder %s3957_s24, %s3107_s15 }
 0x398   : > { %718 = vrot.lane.b32.xlu1 %v714_v25, %s3218_s14  ;;  %p3109_p10 = pnand %p3108_p2, %p4060_p0 }
 0x39a   : > { %p3110_p11 = pneg %p3109_p10 }
 0x39c   : > { %883 = vrot.lane.b32.xlu1 %v714_v25, %s3219_s13 }
 0x406   : > { %v3722_v27 = vpop.permute.xlu1 %716  ;;  %v3728_v29 = vpop.permute.xlu0 %720 }
 0x407   : > { %885 = vrot.lane.b32.xlu1 %v3722_v27, %s3219_s13  ;;  %v770_v39 = vrot.slane %v3728_v29, %v3736_v37  ;;  %v762_v41 = vrot.slane %v3722_v27, %v3736_v37 }
 0x409   : > { %v771_v47 = vcombine.low %v762_v41, %v770_v39  ;;  %v772_v49 = vcombine.high %v762_v41, %v770_v39 }
 0x40a   : > { %v3725_v28 = vpop.permute.xlu1 %718 }
 0x40b   : > { %887 = vrot.lane.b32.xlu1 %v3725_v28, %s3219_s13  ;;  %v736_v38 = vrot.slane %v3725_v28, %v3736_v37  ;;  %v3755_v52 = vrot.slane %v771_v47, %v3746_v46  ;;  %v3758_v54 = vrot.slane %v772_v49, %v3746_v46 }
 0x40d   : > { %v737_v44 = vcombine.low %v728_v43, %v736_v38  ;;  %v738_v45 = vcombine.high %v728_v43, %v736_v38  ;;  %v787_v62 = vcombine.high %v3755_v52, %v3223_v57  ;;  %v788_v1 = vcombine.high %v3758_v54, %v3223_v57 }
 0x40e   : > { %v884_v42 = vpop.permute.xlu1 %883  ;;  %v794_v7 = vshrl.u32 %v3755_v52, 16  ;;  %v810_v13 = vshrl.u32 %v3758_v54, 16 }
 0x40f   : > { %889 = vrot.lane.b32.xlu1 %v3728_v29, %s3219_s13  ;;  %v3749_v50 = vrot.slane %v737_v44, %v3746_v46  ;;  %v3752_v51 = vrot.slane %v738_v45, %v3746_v46  ;;  %v898_v55 = vrot.slane %v884_v42, %v3736_v37  ;;  %v802_v12 = vshrl.u32 %v787_v62, 16  ;;  %s4059_s13 = sld [smem:[#allocation38_spill]] }
 0x410   : > { %v818_v16 = vshrl.u32 %v788_v1, 16 }
 0x411   : > { %v753_v58 = vcombine.high %v3749_v50, %v3223_v57  ;;  %v754_v59 = vcombine.high %v3752_v51, %v3223_v57  ;;  %v793_v2 = vshrl.u32 %v3749_v50, 16  ;;  %v809_v5 = vshrl.u32 %v3752_v51, 16 }
 0x413   : > { %1053 = vrot.lane.b32.xlu1 %v714_v25, %s3220_s16  ;;  %v801_v9 = vshrl.u32 %v753_v58, 16  ;;  %v817_v10 = vshrl.u32 %v754_v59, 16  ;;  %v795_v17 = vpack.i.b16 %v794_v7, %v793_v2  ;;  %v799_v18 = vpack.i.b16 %v787_v62, %v753_v58 }
 0x414   : > { %v811_v20 = vpack.i.b16 %v810_v13, %v809_v5  ;;  %v815_v21 = vpack.i.b16 %v788_v1, %v754_v59  ;;  %v807_v59 = vpack.i.b16 %v3758_v54, %v3752_v51 }
 0x415   : > { %v803_v24 = vpack.i.b16 %v802_v12, %v801_v9  ;;  %v819_v25 = vpack.i.b16 %v818_v16, %v817_v10 }
 0x416   : > { %v829_v2 = vcombine.low %v799_v18, %v815_v21 }
 0x418   : > { %v836_v51 = vrot.slane %v829_v2, %v3736_v37 }
 0x479   : > { %v886_v48 = vpop.permute.xlu1 %885 }
 0x47a   : > { %v932_v6 = vrot.slane %v886_v48, %v3736_v37 }
 0x47d   : > { %v888_v53 = vpop.permute.xlu1 %887 }
 0x47e   : > { %v906_v56 = vrot.slane %v888_v53, %v3736_v37 }
 0x480   : > { %v907_v60 = vcombine.low %v898_v55, %v906_v56  ;;  %v908_v61 = vcombine.high %v898_v55, %v906_v56  ;;  %v791_v55 = vpack.i.b16 %v3755_v52, %v3749_v50 }
 0x481   : > { %v890_v63 = vpop.permute.xlu1 %889 }
 0x482   : > { %v915_v3 = vrot.slane %v907_v60, %v3746_v46  ;;  %v940_v4 = vrot.slane %v890_v63, %v3736_v37  ;;  %v922_v11 = vrot.slane %v908_v61, %v3746_v46  ;;  %v854_v60 = vcombine.low %v803_v24, %v819_v25 }
 0x484   : > { %v941_v14 = vcombine.low %v932_v6, %v940_v4  ;;  %v942_v15 = vcombine.high %v932_v6, %v940_v4  ;;  %v923_v19 = vcombine.high %v915_v3, %v3223_v57  ;;  %v924_v26 = vcombine.high %v922_v11, %v3223_v57 }
 0x485   : > { %v963_v30 = vshrl.u32 %v915_v3, 16  ;;  %v979_v39 = vshrl.u32 %v922_v11, 16  ;;  %v821_v6 = vcombine.low %v791_v55, %v807_v59  ;;  %v861_v7 = vrot.slane %v854_v60, %v3736_v37 }
 0x486   : > { %v949_v22 = vrot.slane %v941_v14, %v3746_v46  ;;  %v956_v23 = vrot.slane %v942_v15, %v3746_v46  ;;  %v971_v38 = vshrl.u32 %v923_v19, 16  ;;  %v987_v47 = vshrl.u32 %v924_v26, 16 }
 0x488   : > { %v957_v31 = vcombine.high %v949_v22, %v3223_v57  ;;  %v958_v33 = vcombine.high %v956_v23, %v3223_v57  ;;  %v961_v35 = vpack.i.b16 %v949_v22, %v915_v3  ;;  %v964_v36 = vshrl.u32 %v949_v22, 16 }
 0x489   : > { %v977_v40 = vpack.i.b16 %v956_v23, %v922_v11  ;;  %v980_v41 = vshrl.u32 %v956_v23, 16  ;;  %v846_v3 = vcombine.low %v795_v17, %v811_v20  ;;  %v828_v11 = vrot.slane %v821_v6, %v3736_v37 }
 0x48a   : > { %v965_v42 = vpack.i.b16 %v964_v36, %v963_v30  ;;  %v969_v43 = vpack.i.b16 %v957_v31, %v923_v19  ;;  %v972_v44 = vshrl.u32 %v957_v31, 16  ;;  %v985_v45 = vpack.i.b16 %v958_v33, %v924_v26 }
 0x48b   : > { %v981_v48 = vpack.i.b16 %v980_v41, %v979_v39  ;;  %v988_v49 = vshrl.u32 %v958_v33, 16  ;;  %v991_v53 = vcombine.low %v961_v35, %v977_v40  ;;  %v853_v54 = vrot.slane %v846_v3, %v3736_v37 }
 0x48c   : > { %v973_v56 = vpack.i.b16 %v972_v44, %v971_v38  ;;  %v999_v58 = vcombine.low %v969_v43, %v985_v45  ;;  %v837_v14 = vcombine.low %v828_v11, %v836_v51 }
 0x48d   : > { %v989_v61 = vpack.i.b16 %v988_v49, %v987_v47  ;;  %v1016_v62 = vcombine.low %v965_v42, %v981_v48  ;;  %v998_v63 = vrot.slane %v991_v53, %v3736_v37  ;;  %v862_v13 = vcombine.low %v853_v54, %v861_v7 }
 0x48e   : > { %v1006_v1 = vrot.slane %v999_v58, %v3736_v37  ;;  %v844_v23 = vrot.slane %v837_v14, %v3746_v46  ;;  %v1226_v48 = vand.u32 127, %v725_v32 }
 0x48f   : > { %v1024_v4 = vcombine.low %v973_v56, %v989_v61  ;;  %v1023_v50 = vrot.slane %v1016_v62, %v3736_v37  ;;  %v869_v20 = vrot.slane %v862_v13, %v3746_v46 }
 0x490   : > { %v1007_v5 = vcombine.low %v998_v63, %v1006_v1  ;;  %v845_v31 = vcombine.high %v844_v23, %v3223_v57  ;;  %v874_v40 = vshrl.u32 %v844_v23, 16  ;;  %vm1412_vm3 = vcmp.ge.s32.totalorder %v3733_v34, %v1226_v48 }
 0x491   : > { %v1031_v52 = vrot.slane %v1024_v4, %v3736_v37  ;;  %v870_v26 = vcombine.high %v869_v20, %v3223_v57  ;;  %v873_v30 = vpack.i.b16 %v869_v20, %v844_v23  ;;  %v875_v39 = vshrl.u32 %v869_v20, 16 }
 0x492   : > { %v1014_v9 = vrot.slane %v1007_v5, %v3746_v46  ;;  %v880_v45 = vshrl.u32 %v845_v31, 16 }
 0x493   : > { %v1032_v10 = vcombine.low %v1023_v50, %v1031_v52  ;;  %v879_v36 = vpack.i.b16 %v870_v26, %v845_v31  ;;  %v876_v42 = vpack.i.b16 %v875_v39, %v874_v40  ;;  %v881_v44 = vshrl.u32 %v870_v26, 16 }
 0x494   : > { %v1015_v16 = vcombine.high %v1014_v9, %v3223_v57  ;;  %v1044_v24 = vshrl.u32 %v1014_v9, 16 }
 0x495   : > { %v1039_v12 = vrot.slane %v1032_v10, %v3746_v46  ;;  %v882_v47 = vpack.i.b16 %v881_v44, %v880_v45 }
 0x496   : > { %v1050_v38 = vshrl.u32 %v1015_v16, 16 }
 0x497   : > { %v1043_v15 = vpack.i.b16 %v1039_v12, %v1014_v9  ;;  %v1040_v17 = vcombine.high %v1039_v12, %v3223_v57  ;;  %v1045_v21 = vshrl.u32 %v1039_v12, 16 }
 0x499   : > { %v1232_v18 = vsel %vm1227_vm2, %v1043_v15, 0  ;;  %v1049_v19 = vpack.i.b16 %v1040_v17, %v1015_v16  ;;  %v1046_v25 = vpack.i.b16 %v1045_v21, %v1044_v24  ;;  %v1051_v33 = vshrl.u32 %v1040_v17, 16 }
 0x49a   : > { %2432 = vmatpush3.bf16.xpose.msra.mxu0 %v1232_v18 }
 0x49b   : > { %v1324_v22 = vsel %vm1227_vm2, %v1049_v19, 0  ;;  %2437 = vmatprep.subr.bf16.mxu0 %v3214_v8  ;;  %v1278_v35 = vsel %vm1227_vm2, %v1046_v25, 0  ;;  %v1052_v41 = vpack.i.b16 %v1051_v33, %v1050_v38 }
 0x49c   : > { %2444 = vmatpush3.bf16.xpose.msra.mxu1 %v1324_v22 }
 0x49d   : > { %2455 = vmatprep.subr.bf16.mxu1 %v3214_v8  ;;  %v1370_v43 = vsel %vm1227_vm2, %v1052_v41, 0 }
 0x4a1   : > { %2434 = vmatmul.mubr.msk.bf16.vlgmr.msra.gmra.mrb[4].mxu0 %vm1227_vm2, %v873_v30 }
 0x4a2   : > { %2438 = vmatpush3.bf16.xpose.msra.mxu0 %v1278_v35  ;;  %2439 = vmatprep.mubr.msk.bf16.mxu0 %vm3215_vm1, %v3214_v8 }
 0x4a3   : > { %2446 = vmatmul.mubr.msk.bf16.vlgmr.msra.gmra.mrb[0].mxu1 %vm1227_vm2, %v879_v36  ;;  %2449 = vmatprep.subr.bf16.mxu0 %v3214_v8 }
 0x4a4   : > { %2457 = vmatprep.mubr.msk.bf16.mxu1 %vm3215_vm1, %v3214_v8 }
 0x4a9   : > { %2440 = vmatmul.mubr.msk.bf16.vlgmr.msra.gmra.mrb[8].mxu0 %vm1227_vm2, %v876_v42 }
 0x4aa   : > { %2450 = vmatpush3.bf16.xpose.msra.mxu0 %v1370_v43  ;;  %2451 = vmatprep.mubr.msk.bf16.mxu0 %vm3215_vm1, %v3214_v8 }
 0x4ab   : > { %2461 = vmatprep.subr.bf16.mxu0 %v3214_v8 }
 0x4b1   : > { %2452 = vmatmul.mubr.msk.bf16.vlgmr.msra.gmra.mrb[12].mxu0 %vm1227_vm2, %v882_v47 }
 0x4b2   : > { %2463 = vmatprep.mubr.msk.bf16.mxu0 %vm3215_vm1, %v3214_v8 }
 0x574   : > { %v1268_v49 = vpop.f32.mrb[4].mxu0 }
 0x575   : > { %v1415_v53 = vsel %vm1412_vm3, %v1268_v49, -1e+30  ;;  %v2435_v55 = vpop.f32.mrb[5].mxu0 }
 0x576   : > { %v1271_v56 = vpop.f32.mrb[6].mxu0  ;;  %v1360_v58 = vpop.f32.mrb[0].mxu1  ;;  %v1419_v59 = vsel %vm1227_vm2, %v1415_v53, -inf }
 0x577   : > { %v2447_v60 = vpop.f32.mrb[1].mxu1  ;;  %1420 = vmax.xlane.f32.xlu1 %v1419_v59  ;;  %v2436_v61 = vpop.f32.mrb[7].mxu0  ;;  %v3846_v9 = vsel %vm1412_vm3, %v1360_v58, -1e+30 }
 0x578   : > { %v1363_v62 = vpop.f32.mrb[2].mxu1 }
 0x579   : > { %v2448_v63 = vpop.f32.mrb[3].mxu1 }
 0x57c   : > { %v1314_v1 = vpop.f32.mrb[8].mxu0 }
 0x57d   : > { %v1416_v32 = vsel %vm1412_vm3, %v1314_v1, -1e+30  ;;  %v2441_v2 = vpop.f32.mrb[9].mxu0 }
 0x57e   : > { %v1317_v3 = vpop.f32.mrb[10].mxu0  ;;  %v1422_v4 = vsel %vm1227_vm2, %v1416_v32, -inf }
 0x57f   : > { %1423 = vmax.xlane.f32.xlu0 %v1422_v4  ;;  %v2442_v5 = vpop.f32.mrb[11].mxu0 }
 0x584   : > { %v1406_v6 = vpop.f32.mrb[12].mxu0 }
 0x585   : > { %v2453_v7 = vpop.f32.mrb[13].mxu0  ;;  %v3840_v51 = vsel %vm1412_vm3, %v1406_v6, -1e+30 }
 0x586   : > { %v1409_v50 = vpop.f32.mrb[14].mxu0  ;;  %v1428_v54 = vsel %vm1227_vm2, %v3840_v51, -inf }
 0x587   : > { %v2454_v52 = vpop.f32.mrb[15].mxu0 }
 0x588   : > { %1057 = vrot.lane.b32.xlu1 %v3725_v28, %s3220_s16  ;;  %v1425_v28 = vsel %vm1227_vm2, %v3846_v9, -inf }
 0x58c   : > { %1059 = vrot.lane.b32.xlu1 %v3728_v29, %s3220_s16  ;;  %v1054_v29 = vpop.permute.xlu1 %1053 }
 0x58d   : > { %v1068_v34 = vrot.slane %v1054_v29, %v3736_v37 }
 0x595   : > { %1055 = vrot.lane.b32.xlu0 %v3722_v27, %s3220_s16  ;;  %s3955_s16 = scalar_lea.hbm %s4059_s13, %s2386_s17 }
 0x5b0   : > { %1429 = vmax.xlane.f32.xlu1 %v1428_v54 }
 0x5b4   : > { %1426 = vmax.xlane.f32.xlu0 %v1425_v28 }
 0x604   : > { %v3850_v10 = vpop.xlane.xlu1 %1420 }
 0x605   : > { %v1431_v27 = vmax.f32 %v3850_v10, -1e+30 }
 0x607   : > { %v1447_v11 = vsub.f32 %v1415_v53, %v1431_v27 }
 0x608   : > { %v1058_v12 = vpop.permute.xlu1 %1057 }
 0x609   : > { %v1451_v13 = vmul.f32 1.442695, %v1447_v11  ;;  %v1076_v14 = vrot.slane %v1058_v12, %v3736_v37 }
 0x60b   : > { %2713 = vpow2.f32 %v1451_v13  ;;  %v1077_v15 = vcombine.low %v1068_v34, %v1076_v14  ;;  %v1078_v18 = vcombine.high %v1068_v34, %v1076_v14 }
 0x60c   : > { %v3857_v16 = vpop.xlane.xlu0 %1423  ;;  %v1060_v19 = vpop.permute.xlu1 %1059 }
 0x60d   : > { %v1432_v17 = vmax.f32 %v3857_v16, -1e+30  ;;  %v1085_v20 = vrot.slane %v1077_v15, %v3746_v46  ;;  %v1110_v23 = vrot.slane %v1060_v19, %v3736_v37  ;;  %v1092_v25 = vrot.slane %v1078_v18, %v3746_v46 }
 0x60f   : > { %v1448_v21 = vsub.f32 %v1416_v32, %v1432_v17  ;;  %v1093_v33 = vcombine.high %v1085_v20, %v3223_v57  ;;  %v1094_v39 = vcombine.high %v1092_v25, %v3223_v57  ;;  %v1133_v40 = vshrl.u32 %v1085_v20, 16 }
 0x610   : > { %v1056_v22 = vpop.permute.xlu0 %1055  ;;  %v1149_v41 = vshrl.u32 %v1092_v25, 16 }
 0x611   : > { %v1102_v24 = vrot.slane %v1056_v22, %v3736_v37  ;;  %v1453_v26 = vmul.f32 1.442695, %v1448_v21  ;;  %v1141_v47 = vshrl.u32 %v1093_v33, 16  ;;  %v1157_v60 = vshrl.u32 %v1094_v39, 16 }
 0x613   : > { %v1111_v30 = vcombine.low %v1102_v24, %v1110_v23  ;;  %v1112_v31 = vcombine.high %v1102_v24, %v1110_v23  ;;  %2715 = vpow2.f32 %v1453_v26 }
 0x615   : > { %v1119_v35 = vrot.slane %v1111_v30, %v3746_v46  ;;  %v1126_v36 = vrot.slane %v1112_v31, %v3746_v46  ;;  %v2714_v38 = vpop.eup %2713 }
 0x616   : > { %v1463_v53 = vsel %vm1227_vm2, %v2714_v38, 0.0 }
 0x617   : > { %v1127_v42 = vcombine.high %v1119_v35, %v3223_v57  ;;  %v1128_v43 = vcombine.high %v1126_v36, %v3223_v57  ;;  %v1131_v44 = vpack.i.b16 %v1119_v35, %v1085_v20  ;;  %v1134_v45 = vshrl.u32 %v1119_v35, 16  ;;  %1464 = vadd.xlane.f32.xlu0 %v1463_v53 }
 0x618   : > { %v1147_v48 = vpack.i.b16 %v1126_v36, %v1092_v25  ;;  %v1150_v49 = vshrl.u32 %v1126_v36, 16  ;;  %v1479_v25 = vpack.c.bf16 %v2714_v38, %v2714_v38 }
 0x619   : > { %v1135_v55 = vpack.i.b16 %v1134_v45, %v1133_v40  ;;  %v1139_v56 = vpack.i.b16 %v1127_v42, %v1093_v33  ;;  %v1142_v58 = vshrl.u32 %v1127_v42, 16  ;;  %v1155_v59 = vpack.i.b16 %v1128_v43, %v1094_v39 }
 0x61a   : > { %v1151_v61 = vpack.i.b16 %v1150_v49, %v1149_v41  ;;  %v1158_v62 = vshrl.u32 %v1128_v43, 16  ;;  %v1161_v63 = vcombine.low %v1131_v44, %v1147_v48  ;;  %v1436_v49 = vsub.f32 -1e+30, %v1432_v17 }
 0x61b   : > { %v1143_v1 = vpack.i.b16 %v1142_v58, %v1141_v47  ;;  %v1169_v32 = vcombine.low %v1139_v56, %v1155_v59 }
 0x61c   : > { %v1159_v2 = vpack.i.b16 %v1158_v62, %v1157_v60  ;;  %v1186_v3 = vcombine.low %v1135_v55, %v1151_v61  ;;  %v1168_v4 = vrot.slane %v1161_v63, %v3736_v37  ;;  %v1441_v55 = vmul.f32 1.442695, %v1436_v49 }
 0x61d   : > { %v1176_v5 = vrot.slane %v1169_v32, %v3736_v37  ;;  %v2716_v7 = vpop.eup %2715 }
 0x61e   : > { %v1194_v6 = vcombine.low %v1143_v1, %v1159_v2  ;;  %v1466_v52 = vsel %vm1227_vm2, %v2716_v7, 0.0  ;;  %v1193_v54 = vrot.slane %v1186_v3, %v3736_v37  ;;  %v1480_v31 = vpack.c.bf16 %v2716_v7, %v2716_v7 }
 0x61f   : > { %v1177_v50 = vcombine.low %v1168_v4, %v1176_v5  ;;  %1467 = vadd.xlane.f32.xlu0 %v1466_v52 }
 0x620   : > { %v1201_v28 = vrot.slane %v1194_v6, %v3736_v37 }
 0x621   : > { %v1184_v29 = vrot.slane %v1177_v50, %v3746_v46 }
 0x622   : > { %v1202_v11 = vcombine.low %v1193_v54, %v1201_v28 }
 0x623   : > { %v1185_v12 = vcombine.high %v1184_v29, %v3223_v57  ;;  %v1214_v34 = vshrl.u32 %v1184_v29, 16 }
 0x624   : > { %v1209_v13 = vrot.slane %v1202_v11, %v3746_v46 }
 0x625   : > { %v1220_v19 = vshrl.u32 %v1185_v12, 16 }
 0x626   : > { %v1213_v14 = vpack.i.b16 %v1209_v13, %v1184_v29  ;;  %v1215_v15 = vshrl.u32 %v1209_v13, 16  ;;  %v1210_v18 = vcombine.high %v1209_v13, %v3223_v57 }
 0x628   : > { %v1488_v20 = vsel %vm1486_vm4, %v1213_v14, 0  ;;  %v1216_v21 = vpack.i.b16 %v1215_v15, %v1214_v34  ;;  %v1219_v22 = vpack.i.b16 %v1210_v18, %v1185_v12  ;;  %v1221_v23 = vshrl.u32 %v1210_v18, 16 }
 0x629   : > { %2456 = vmatpush3.bf16.msra.mxu1 %v1488_v20 }
 0x62a   : > { %v1534_v24 = vsel %vm1486_vm4, %v1216_v21, 0  ;;  %2467 = vmatprep.subr.bf16.mxu1 %v3214_v8  ;;  %v1222_v26 = vpack.i.b16 %v1221_v23, %v1220_v19  ;;  %v1580_v30 = vsel %vm1486_vm4, %v1219_v22, 0 }
 0x62b   : > { %2462 = vmatpush3.bf16.msra.mxu0 %v1534_v24 }
 0x62c   : > { %2458 = vmatmul.mubr.msk.bf16.vlgmr.msra.gmra.mrb[4].mxu1 %vm1227_vm2, %v1479_v25  ;;  %2473 = vmatprep.subr.bf16.mxu0 %v3214_v8  ;;  %v1626_v57 = vsel %vm1486_vm4, %v1222_v26, 0 }
 0x62d   : > { %2468 = vmatpush3.bf16.msra.mxu1 %v1580_v30  ;;  %2469 = vmatprep.mubr.msk.bf16.mxu1 %vm3215_vm1, %v3214_v8 }
 0x62e   : > { %2464 = vmatmul.mubr.msk.bf16.vlgmr.msra.gmra.mrb[16].mxu0 %vm1227_vm2, %v1480_v31  ;;  %2479 = vmatprep.subr.bf16.mxu1 %v3214_v8 }
 0x62f   : > { %2474 = vmatpush3.bf16.msra.mxu0 %v1626_v57  ;;  %2475 = vmatprep.mubr.msk.bf16.mxu0 %vm3215_vm1, %v3214_v8 }
 0x630   : > { %2487 = vmatprep.subr.bf16.mxu0 %v3214_v8 }
 0x63d   : > { %v1430_v33 = vpop.xlane.xlu1 %1429 }
 0x63e   : > { %v1434_v35 = vmax.f32 %v1430_v33, -1e+30 }
 0x640   : > { %v1450_v36 = vsub.f32 %v3840_v51, %v1434_v35  ;;  %v1438_v3 = vsub.f32 -1e+30, %v1434_v35 }
 0x641   : > { %v1427_v38 = vpop.xlane.xlu0 %1426 }
 0x642   : > { %v1457_v39 = vmul.f32 1.442695, %v1450_v36  ;;  %v1433_v40 = vmax.f32 %v1427_v38, -1e+30  ;;  %v1445_v29 = vmul.f32 1.442695, %v1438_v3 }
 0x644   : > { %v1449_v41 = vsub.f32 %v3846_v9, %v1433_v40  ;;  %2717 = vpow2.f32 %v1457_v39  ;;  %v1435_v9 = vsub.f32 -1e+30, %v1431_v27  ;;  %v1437_v11 = vsub.f32 -1e+30, %v1433_v40 }
 0x646   : > { %v1455_v42 = vmul.f32 1.442695, %v1449_v41  ;;  %v1439_v53 = vmul.f32 1.442695, %v1435_v9  ;;  %v1443_v12 = vmul.f32 1.442695, %v1437_v11 }
 0x648   : > { %2719 = vpow2.f32 %v1455_v42 }
 0x649   : > { %2721 = vpow2.f32 %v1439_v53 }
 0x64a   : > { %2723 = vpow2.f32 %v1441_v55 }
 0x64e   : > { %v2718_v43 = vpop.eup %2717 }
 0x64f   : > { %v1472_v44 = vsel %vm1227_vm2, %v2718_v43, 0.0  ;;  %v1482_v45 = vpack.c.bf16 %v2718_v43, %v2718_v43 }
 0x650   : > { %1473 = vadd.xlane.f32.xlu0 %v1472_v44 }
 0x651   : > { %2476 = vmatmul.mubr.msk.bf16.vlgmr.msra.gmra.mrb[20].mxu0 %vm1227_vm2, %v1482_v45 }
 0x652   : > { %v2720_v47 = vpop.eup %2719  ;;  %2491 = vmatprep.mubr.msk.bf16.mxu0 %vm3215_vm1, %v3214_v8 }
 0x653   : > { %v1469_v51 = vsel %vm1227_vm2, %v2720_v47, 0.0  ;;  %v1481_v48 = vpack.c.bf16 %v2720_v47, %v2720_v47  ;;  %v2722_v56 = vpop.eup %2721 }
 0x654   : > { %1470 = vadd.xlane.f32.xlu1 %v1469_v51  ;;  %v2724_v59 = vpop.eup %2723  ;;  %v1459_v60 = vmul.f32 0.0, %v2722_v56  ;;  %v2699_v56 = vld [vmem:[#allocation11] sm:$0xff]  }
 0x655   : > { %2470 = vmatmul.mubr.msk.bf16.vlgmr.msra.gmra.mrb[8].mxu1 %vm1227_vm2, %v1481_v48  ;;  %v1460_v63 = vmul.f32 0.0, %v2724_v59 }
 0x656   : > { %2483 = vmatprep.mubr.msk.bf16.mxu1 %vm3215_vm1, %v3214_v8  ;;  %2480 = vmatpush3.bf16.msra.mxu1 %v2699_v56  ;;  %v2708_v56 = vld [vmem:[#allocation20 + $0x28] sm:$0xff]  }
 0x657   : > { %2481 = vmatprep.subr.bf16.mxu1 %v3214_v8 }
 0x6a4   : > { %v1465_v58 = vpop.xlane.xlu0 %1464 }
 0x6a5   : > { %v1475_v62 = vadd.f32 %v1465_v58, %v1459_v60 }
 0x6a7   : > { %2725 = vrcp.f32 %v1475_v62 }
 0x6ac   : > { %v1468_v61 = vpop.xlane.xlu0 %1467 }
 0x6ad   : > { %v1476_v1 = vadd.f32 %v1468_v61, %v1460_v63 }
 0x6af   : > { %2727 = vrcp.f32 %v1476_v1 }
 0x6b0   : > { %2729 = vpow2.f32 %v1445_v29 }
 0x6b1   : > { %v2726_v2 = vpop.eup %2725  ;;  %2731 = vpow2.f32 %v1443_v12 }
 0x6b9   : > { %v2728_v50 = vpop.eup %2727 }
 0x6ba   : > { %v2730_v13 = vpop.eup %2729 }
 0x6bb   : > { %v1462_v34 = vmul.f32 0.0, %v2730_v13  ;;  %v2732_v15 = vpop.eup %2731 }
 0x6bc   : > { %v1461_v20 = vmul.f32 0.0, %v2732_v15 }
 0x6dd   : > { %v1474_v14 = vpop.xlane.xlu0 %1473 }
 0x6de   : > { %v1478_v18 = vadd.f32 %v1474_v14, %v1462_v34 }
 0x6e0   : > { %2733 = vrcp.f32 %v1478_v18 }
 0x6e1   : > { %v1471_v19 = vpop.xlane.xlu1 %1470 }
 0x6e2   : > { %v1477_v21 = vadd.f32 %v1471_v19, %v1461_v20  ;;  %v2366_v19 = vld [vmem:[#allocation13] ss:$0 sm:$0xff] }
 0x6e4   : > { %2735 = vrcp.f32 %v1477_v21 }
 0x6ea   : > { %v2734_v25 = vpop.eup %2733 }
 0x6ee   : > { %v2736_v39 = vpop.eup %2735 }
 0x6ff   : > { %v1524_v32 = vpop.f32.mrb[4].mxu1 }
 0x700   : > { %v1668_v10 = vadd.f32 %v1524_v32, %v1459_v60  ;;  %v2459_v27 = vpop.f32.mrb[5].mxu1 }
 0x701   : > { %v1527_v16 = vpop.f32.mrb[6].mxu1  ;;  %v1570_v17 = vpop.f32.mrb[16].mxu0 }
 0x702   : > { %v1676_v4 = vmul.f32 %v2726_v2, %v1668_v10  ;;  %v1669_v5 = vadd.f32 %v1570_v17, %v1460_v63  ;;  %v2460_v6 = vpop.f32.mrb[7].mxu1  ;;  %v2465_v7 = vpop.f32.mrb[17].mxu0  ;;  %v2700_v10 = vld [vmem:[#allocation11 + $0x8] sm:$0xff]  }
 0x703   : > { %v1573_v52 = vpop.f32.mrb[18].mxu0  ;;  %2482 = vmatpush3.bf16.msra.mxu1 %v2700_v10 }
 0x704   : > { %v1677_v54 = vmul.f32 %v2728_v50, %v1669_v5  ;;  %v2466_v28 = vpop.f32.mrb[19].mxu0  ;;  %2495 = vmatprep.subr.bf16.mxu1 %v3214_v8 }
 0x724   : > { %v1662_v22 = vpop.f32.mrb[20].mxu0 }
 0x725   : > { %v1671_v23 = vadd.f32 %v1662_v22, %v1462_v34  ;;  %v2477_v24 = vpop.f32.mrb[21].mxu0 }
 0x726   : > { %v1665_v26 = vpop.f32.mrb[22].mxu0 }
 0x727   : > { %v1679_v30 = vmul.f32 %v2734_v25, %v1671_v23  ;;  %v2478_v31 = vpop.f32.mrb[23].mxu0 }
 0x728   : > { %v1616_v57 = vpop.f32.mrb[8].mxu1 }
 0x729   : > { %v1696_v33 = vcombine.low %v1677_v54, %v1679_v30  ;;  %v1697_v35 = vcombine.high %v1677_v54, %v1679_v30  ;;  %v1670_v36 = vadd.f32 %v1616_v57, %v1461_v20  ;;  %v2471_v38 = vpop.f32.mrb[9].mxu1 }
 0x72a   : > { %v1619_v40 = vpop.f32.mrb[10].mxu1  ;;  %v2702_v38 = vld [vmem:[#allocation17 + $0x8] sm:$0xff]  }
 0x72b   : > { %v1678_v41 = vmul.f32 %v2736_v39, %v1670_v36  ;;  %v2472_v42 = vpop.f32.mrb[11].mxu1  ;;  %v1704_v45 = vrot.slane %v1696_v33, %v3736_v37  ;;  %v1711_v47 = vrot.slane %v1697_v35, %v3736_v37  ;;  %v2701_v36 = vld [vmem:[#allocation17] sm:$0xff]  }
 0x72c   : > { %2488 = vmatpush3.bf16.msra.mxu0 %v2701_v36 }
 0x72d   : > { %v1680_v43 = vcombine.low %v1676_v4, %v1678_v41  ;;  %v1681_v44 = vcombine.high %v1676_v4, %v1678_v41  ;;  %2489 = vmatprep.subr.bf16.mxu0 %v3214_v8 }
 0x72f   : > { %v1688_v51 = vrot.slane %v1680_v43, %v3736_v37  ;;  %v1695_v48 = vrot.slane %v1681_v44, %v3736_v37  ;;  %v2370_v43 = vld [vmem:[#allocation14] ss:$0 sm:$0xff] }
 0x730   : > { %2490 = vmatpush3.bf16.msra.mxu0 %v2702_v38 }
 0x731   : > { %v1712_v9 = vcombine.low %v1688_v51, %v1704_v45  ;;  %v1713_v49 = vcombine.high %v1688_v51, %v1704_v45  ;;  %v1728_v53 = vcombine.low %v1695_v48, %v1711_v47  ;;  %v1729_v55 = vcombine.high %v1695_v48, %v1711_v47  ;;  %v2371_v45 = vld [vmem:[#allocation16] ss:$0 sm:$0xff] }
 0x733   : > { %v1720_v58 = vrot.slane %v1712_v9, %v3746_v46  ;;  %v1727_v59 = vrot.slane %v1713_v49, %v3746_v46  ;;  %v1736_v60 = vrot.slane %v1728_v53, %v3746_v46  ;;  %v1743_v61 = vrot.slane %v1729_v55, %v3746_v46  ;;  %v2704_v9 = vld [vmem:[#allocation20 + $0x8] sm:$0xff]   ;;  %v2705_v49 = vld [vmem:[#allocation20 + $0x10] sm:$0xff]   ;;  %v2706_v53 = vld [vmem:[#allocation20 + $0x18] sm:$0xff]  }
 0x734   : > { %v2707_v55 = vld [vmem:[#allocation20 + $0x20] sm:$0xff]  }
 0x735   : > { %v1748_v62 = vcombine.low %v1720_v58, %v1727_v59  ;;  %v2364_v63 = vcombine.high %v1720_v58, %v1727_v59  ;;  %v1764_v1 = vcombine.low %v1736_v60, %v1743_v61  ;;  %v2365_v32 = vcombine.high %v1736_v60, %v1743_v61  ;;  %v2709_v58 = vld [vmem:[#allocation20 + $0x30] sm:$0xff]   ;;  %v2710_v59 = vld [vmem:[#allocation20 + $0x38] sm:$0xff]  }
 0x736   : > { %v2372_v60 = vld [vmem:[#allocation19] ss:$0 sm:$0xff] }
 0x737   : > { %v1755_v27 = vrot.slane %v1748_v62, %v3736_v37  ;;  %v1763_v2 = vrot.slane %v2364_v63, %v3736_v37  ;;  %v1771_v16 = vrot.slane %v1764_v1, %v3736_v37  ;;  %v1779_v17 = vrot.slane %v2365_v32, %v3736_v37 }
 0x739   : > { %v1781_v3 = vcombine.high %v1755_v27, %v1763_v2  ;;  %v1797_v4 = vcombine.high %v1771_v16, %v1779_v17  ;;  %v1780_v5 = vcombine.low %v1755_v27, %v1763_v2  ;;  %v1796_v6 = vcombine.low %v1771_v16, %v1779_v17 }
 0x73b   : > { %v1795_v7 = vrot.slane %v1781_v3, %v3746_v46  ;;  %v1811_v50 = vrot.slane %v1797_v4, %v3746_v46  ;;  %v1788_v52 = vrot.slane %v1780_v5, %v3746_v46  ;;  %v1804_v54 = vrot.slane %v1796_v6, %v3746_v46 }
 0x73d   : > { %v1814_v28 = vcombine.low %v1795_v7, %v1811_v50  ;;  %v1813_v29 = vcombine.high %v1788_v52, %v1804_v54  ;;  %v1815_v11 = vcombine.high %v1795_v7, %v1811_v50  ;;  %v1812_v12 = vcombine.low %v1788_v52, %v1804_v54  ;;  %v2376_v7 = vld [vmem:[#allocation22] ss:$0 sm:$0xff] }
 0x73f   : > { %1821 = vrot.lane.b32.xlu0 %v1814_v28, %s3224_s22  ;;  %1817 = vrot.lane.b32.xlu1 %v1813_v29, %s3225_s30  ;;  %s3227_s22 = smov [#allocation23]  }
 0x740   : > { %s3111_s30 = sshll.u32 %s3227_s22, 4  ;;  %s3112_s30 = int_to_ptr.vmem [resolvable:$false] %s3111_s30 }
 0x741   : > { %p3114_p12 = scmp.lt.s32.totalorder %s3957_s24, %s3112_s30 }
 0x743   : > { %1825 = vrot.lane.b32.xlu1 %v1815_v11, %s3226_s2  ;;  %s3113_s2 = scalar_lea.vmem %s3112_s30, 256 }
 0x744   : > { %p3115_p8 = scmp.lt.s32.totalorder %s3113_s2, %s3107_s15 }
 0x746   : > { %p3116_p5 = por %p3115_p8, %p3114_p12 }
 0x748   : > { %p3117_p7 = pnand %p3116_p5, %p3110_p11 }
 0x7b1   : > { %v1818_v37 = vpop.permute.xlu1 %1817  ;;  %v1822_v13 = vpop.permute.xlu0 %1821 }
 0x7b2   : > { %v1828_v14 = vsel %vm1227_vm2, %v1812_v12, %v1818_v37 }
 0x7b3   : > { %v1830_v15 = vsel %vm1829_vm5, %v1828_v14, %v1822_v13 }
 0x7b5   : > { %v1826_v34 = vpop.permute.xlu1 %1825 }
 0x7b6   : > { %v1832_v18 = vsel %vm1831_vm6, %v1830_v15, %v1826_v34 }
 0x7b7   : > { %v1833_v46 = vpack.c.bf16 %v1832_v18, %v1832_v18 }
 0x7b9   : > { %2484 = vmatmul.mubr.msk.bf16.vlgmr.msra.gmra.mrb[12].mxu1 %vm618_vm0, %v1833_v46 }
 0x7ba   : > { %2511 = vmatprep.mubr.msk.bf16.mxu1 %vm3215_vm1, %v3214_v8 }
 0x88c   : > { %v1894_v20 = vpop.f32.mrb[12].mxu1 }
 0x88d   : > { %v1895_v21 = vadd.f32 %v2366_v19, %v1894_v20  ;;  %v2485_v22 = vpop.f32.mrb[13].mxu1 }
 0x88e   : > { %v1897_v23 = vpop.f32.mrb[14].mxu1 }
 0x88f   : > { %v3933_v24 = vadd.f32 %v1895_v21, %v3705_v0  ;;  %v2486_v25 = vpop.f32.mrb[15].mxu1  ;;  %v2703_v0 = vld [vmem:[#allocation20] sm:$0xff]  }
 0x890   : > { %2496 = vmatpush3.bf16.msra.mxu1 %v2703_v0 }
 0x891   : > { %v1903_v26 = vsel %vm618_vm0, %v3933_v24, 0.0  ;;  %2497 = vmatprep.subr.bf16.mxu1 %v3214_v8 }
 0x892   : > { %1904 = vadd.xlane.f32.xlu1 %v1903_v26 }
 0x894   : > { %2498 = vmatpush3.bf16.msra.mxu1 %v2704_v9 }
 0x895   : > { %2499 = vmatprep.subr.bf16.mxu1 %v3214_v8 }
 0x898   : > { %2500 = vmatpush3.bf16.msra.mxu1 %v2705_v49 }
 0x899   : > { %2501 = vmatprep.subr.bf16.mxu1 %v3214_v8 }
 0x89c   : > { %2502 = vmatpush3.bf16.msra.mxu1 %v2706_v53 }
 0x89d   : > { %2503 = vmatprep.subr.bf16.mxu1 %v3214_v8 }
 0x8a0   : > { %2504 = vmatpush3.bf16.msra.mxu1 %v2707_v55 }
 0x8a1   : > { %2505 = vmatprep.subr.bf16.mxu1 %v3214_v8 }
 0x8a4   : > { %2506 = vmatpush3.bf16.msra.mxu1 %v2708_v56 }
 0x8a5   : > { %2507 = vmatprep.subr.bf16.mxu1 %v3214_v8 }
 0x8a8   : > { %2508 = vmatpush3.bf16.msra.mxu1 %v2709_v58 }
 0x8a9   : > { %2509 = vmatprep.subr.bf16.mxu1 %v3214_v8 }
 0x8ac   : > { %2510 = vmatpush3.bf16.msra.mxu1 %v2710_v59 }
 0x91f   : > { %v1905_v30 = vpop.xlane.xlu1 %1904 }
 0x920   : > { %v1906_v31 = vmul.f32 0.03125, %v1905_v30 }
 0x922   : > { %v1907_v57 = vsub.f32 %v3933_v24, %v1906_v31 }
 0x924   : > { %v1908_v33 = vmul.f32 %v1907_v57, %v1907_v57 }
 0x926   : > { %v1909_v35 = vsel %vm618_vm0, %v1908_v33, 0.0 }
 0x927   : > { %1910 = vadd.xlane.f32.xlu0 %v1909_v35 }
 0x9b4   : > { %v1911_v39 = vpop.xlane.xlu0 %1910 }
 0x9b5   : > { %v1912_v40 = vmul.f32 0.03125, %v1911_v39 }
 0x9b7   : > { %v1913_v41 = vadd.f32 1e-05, %v1912_v40 }
 0x9b9   : > { %2737 = vrsqrt.f32 %v1913_v41 }
 0x9c3   : > { %v2738_v42 = vpop.eup %2737 }
 0x9c4   : > { %v1915_v44 = vmul.f32 %v2738_v42, %v1907_v57 }
 0x9c6   : > { %v1922_v47 = vmul.f32 %v2370_v43, %v1915_v44 }
 0x9c8   : > { %v1929_v51 = vadd.f32 %v2371_v45, %v1922_v47 }
 0x9ca   : > { %v1930_v48 = vpack.c.bf16 %v1929_v51, %v1929_v51 }
 0x9cc   : > { %2492 = vmatmul.mubr.msk.bf16.vlgmr.msra.gmra.mrb[24].mxu0 %vm618_vm0, %v1930_v48 }
 0xa9f   : > { %v1991_v61 = vpop.f32.mrb[24].mxu0 }
 0xaa0   : > { %v1992_v62 = vadd.f32 %v2372_v60, %v1991_v61  ;;  %v2493_v63 = vpop.f32.mrb[25].mxu0 }
 0xaa1   : > { %v1994_v1 = vpop.f32.mrb[26].mxu0 }
 0xaa2   : > { %v1997_v32 = vmul.f32 %v1992_v62, %v1992_v62  ;;  %v2494_v10 = vpop.f32.mrb[27].mxu0  ;;  %v2003_v4 = vmul.f32 0.5, %v1992_v62 }
 0xaa4   : > { %v1998_v27 = vmul.f32 %v1997_v32, %v1992_v62 }
 0xaa6   : > { %v1999_v2 = vmul.f32 0.044715, %v1998_v27 }
 0xaa8   : > { %v2000_v16 = vadd.f32 %v1999_v2, %v1992_v62 }
 0xaaa   : > { %v2001_v17 = vmul.f32 0.7978846, %v2000_v16 }
 0xaac   : > { %2739 = vtanh.f32 %v2001_v17 }
 0xab6   : > { %v2740_v3 = vpop.eup %2739 }
 0xab7   : > { %v2004_v5 = vadd.f32 1.0, %v2740_v3 }
 0xab9   : > { %v2005_v6 = vmul.f32 %v2004_v5, %v2003_v4 }
 0xabb   : > { %v2006_v8 = vpack.c.bf16 %v2005_v6, %v2005_v6 }
 0xabd   : > { %2512 = vmatmul.mubr.bf16.vlgmr.msra.gmra.mrb[16].mxu1 %v2006_v8 }
 0xb90   : > { %v2112_v50 = vpop.f32.mrb[16].mxu1 }
 0xb91   : > { %v2113_v52 = vadd.f32 %v2376_v7, %v2112_v50  ;;  %v2513_v54 = vpop.f32.mrb[17].mxu1 }
 0xb92   : > { %v2115_v28 = vpop.f32.mrb[18].mxu1 }
 0xb93   : > { %v2118_v29 = vadd.f32 %v2113_v52, %v3933_v24  ;;  %v2514_v11 = vpop.f32.mrb[19].mxu1 }
 0xb95   : > { %2119 = vst.msk [vmem:[%s613_s23] sm:$0xff] %vm618_vm0, %v2118_v29 }
 0xb96   : > { %3120 = shalt.err (!%p3117_p7)
}
 0xb97   : > { %s3121_s19 = scalar_lea.hbm %s3955_s16, 128  ;;  %s3125_s20 = scalar_lea.hbm %s4059_s13, 256 }
 0xb98   : > { %p3122_p6 = scmp.ne.s32.totalorder %s3955_s16, %s3121_s19  ;;  %p3126_p13 = scmp.lt.u32.totalorder %s3955_s16, %s4059_s13 }
 0xb99   : > { %p3127_p1 = scmp.lt.u32.totalorder %s3125_s20, %s3121_s19  ;;  %p3129_p2 = scmp.lt.u32.totalorder %s3121_s19, %s3955_s16 }
 0xb9a   : > { %p3123_p9 = pnand %p3122_p6, %p4060_p0 }
 0xb9b   : > { %p3128_p3 = por %p3127_p1, %p3126_p13 }
 0xb9c   : > { %p3124_p4 = pneg %p3123_p9 }
 0xb9d   : > { %p3130_p10 = por %p3129_p2, %p3128_p3 }
 0xb9f   : > { %p3131_p11 = pnand %p3130_p10, %p3124_p4 }
 0xba1   : > { %3134 = shalt.err (!%p3131_p11)
}
 0xba2   : > { %2565 = dma.vmem_to_hbm [thread:$0]  (%p4060_p0), %s3957_s24, 128, %s3955_s16, %s2121_s0  }
 0xba3 PF: > { %s2146_s15 = sand.u32 1, %s3185_s25   ;;  %p4061_p12 = scmp.ne.s32.totalorder %s4041_s21, 0 }
 0xba4   : > { %p4062_p8 = scmp.ge.s32.totalorder %s3197_s28, 2  ;;  %s2147_s30 = scalar_lea.sflag [#allocation4], %s2146_s15 }
 0xba6   : > { %p2609_p5 = pnand %p4062_p8, %p4061_p12 }
 0xba8   : > { %3180 = dma.done.wait (!%p2609_p5), %s2147_s30, 128  }
 0xba9   : > { %3182 = vsyncadd (!%p2609_p5), %s2147_s30, 4294967168  ;;  %p32_p7 = scmp.ge.s32.totalorder %s3595_s18, 4   ;;  %s4063_s25 = smov %s3189_s26 }
 0xbaa   : > { %s4064_s26 = smov %s3193_s27  ;;  %s4065_s27 = smov %s3606_s29 }
 0xbab   : > { %s4066_s28 = smov %s3595_s18  ;;  %34 = sbr.rel (!%p32_p7) target bundleno = 17 (0x11), region = 165 }
 0xbb2   :  { %2152 = vsyncpa [#allocation3], 1 }
 0xbb3   :  { %2154 = vsyncpa [#allocation3 + $0x1], 1 }
 0xbb4   :  { %2155 = vsyncpa [#allocation6], 1 }
 0xbb5   :  { %2156 = vsyncpa [#allocation9], 1 }
 0xbb6   :  { %2157 = vsyncpa [#allocation12], 1 }
 0xbb7   :  { %2158 = vsyncpa [#allocation15], 1 }
 0xbb8   :  { %2159 = vsyncpa [#allocation18], 1 }
 0xbb9   :  { %2160 = vsyncpa [#allocation21], 1 }
 0xbba   :  { %2161 = vsyncpa [#allocation4], 1 }
 0xbbb   :  { %2163 = vsyncpa [#allocation4 + $0x1], 1 }

</bundles_post_ra>
